<compile_context>
chip_gen: v7x
topology: tpu7x:2x2x1
jax: 0.10.0
libtpu: 0.0.40
codegen_flags: <defaults>
</compile_context>

<pallas_src>
import functools
import math

import jax
import jax.numpy as jnp
from jax.experimental import pallas as pl
from jax.experimental.pallas import tpu as pltpu


LANE = 128


def _round_up(v, m):
    return ((v + m - 1) // m) * m


def _vmem_budget_bytes():
    # ~7/8 of physical VMEM: 56 MiB on v7x (64 MiB), 112 MiB on v5e/v6e
    # (128 MiB).  Leaves headroom for compiler-internal scratch.
    cap = 64 * 1024 * 1024
    try:
        cap = int(pltpu.get_tpu_info().vmem_capacity_bytes)
    except Exception:
        pass
    return (cap * 7) // 8


def _pad_2d(a, rows, cols, dtype):
    out = jnp.zeros((rows, cols), dtype)
    return out.at[: a.shape[0], : a.shape[1]].set(a.astype(dtype))


def _plan_k_tile(n_pad, d_pad, h_pad, g, budget):
    """Largest K tile whose working set fits the per-generation budget."""
    def working_set(tk):
        resident = tk == n_pad
        adj = (1 if resident else 2) * n_pad * tk * 2          # bf16 adjacency
        fixed = (n_pad * d_pad * 2                             # resident x
                 + n_pad * d_pad * 2                           # h scratch bf16
                 + n_pad * d_pad * 4                           # f32 accumulator
                 + g * n_pad * 2                               # pool matrix
                 + 2 * (d_pad * h_pad + h_pad * h_pad) * 2     # dbl-buf weights
                 + 2 * 8 * h_pad * 4                           # packed params
                 + 2 * g * h_pad * 4)                          # pooled out
        return adj + fixed + (2 << 20)                         # slack
    for tk in [n_pad] + [t for t in (512, 256, 128) if t < n_pad]:
        if n_pad % tk == 0 and working_set(tk) <= budget:
            return tk
    # TODO(synk): very large graphs additionally need node-row tiling or CSR
    # streaming via scalar prefetch; fall back to the smallest K tile.
    return 128


# -------------------- fused multi-layer GIN encoder kernel ------------------


def _encoder_kernel(adj_ref, x_ref, w1_ref, w2_ref, prm_ref, pool_ref,
                    pooled_ref, h_vmem, acc_ref, *, n_true, tk, h_pad):
    l = pl.program_id(0)
    k = pl.program_id(1)
    last_k = pl.num_programs(1) - 1

    @pl.when(jnp.logical_and(l == 0, k == 0))
    def _():
        # Seed the inter-layer feature scratch with the (bf16, padded) input.
        h_vmem[...] = x_ref[...]

    @pl.when(k == 0)
    def _():
        acc_ref[...] = jnp.zeros_like(acc_ref)

    # Streamed GIN aggregation (eps=0): agg = (A + I) @ h, bf16 MXU, f32 acc.
    start = pl.multiple_of(k * tk, tk)
    src = h_vmem[pl.ds(start, tk), :]
    acc_ref[...] += jnp.dot(adj_ref[...], src,
                            preferred_element_type=jnp.float32)

    @pl.when(k == last_k)
    def _():
        b1 = prm_ref[0, 0:1, :]
        b2 = prm_ref[0, 1:2, :]
        gamma = prm_ref[0, 2:3, :]
        beta = prm_ref[0, 3:4, :]

        # GINConv MLP: Linear -> ReLU -> Linear (bf16 operands, f32 accum).
        agg = acc_ref[...].astype(jnp.bfloat16)
        h1 = jnp.dot(agg, w1_ref[0], preferred_element_type=jnp.float32) + b1
        h1 = jnp.maximum(h1, 0.0)
        h2 = jnp.dot(h1.astype(jnp.bfloat16), w2_ref[0],
                     preferred_element_type=jnp.float32) + b2
        xa = jnp.maximum(h2, 0.0)

        # ReLU -> BatchNorm1d (training-mode, biased batch stats over the
        # n_true real node rows; padded rows are masked out of the sums).
        row = jax.lax.broadcasted_iota(jnp.int32, xa.shape, 0)
        mask = (row < n_true).astype(jnp.float32)
        xm = xa * mask
        inv_n = 1.0 / float(n_true)
        mean = jnp.sum(xm, axis=0, keepdims=True) * inv_n
        var = jnp.maximum(
            jnp.sum(xm * xm, axis=0, keepdims=True) * inv_n - mean * mean, 0.0)
        h_bn = (xa - mean) * jax.lax.rsqrt(var + 1e-5) * gamma + beta
        h_bf = h_bn.astype(jnp.bfloat16)

        # global_add_pool: padded node columns of pool_ref are zero, so any
        # junk in padded rows of h_bn never reaches the pooled sums.
        pooled_ref[0] = jnp.dot(pool_ref[...], h_bf,
                                preferred_element_type=jnp.float32)

        # Stash node features for the next layer (bf16, stays in VMEM).
        d_pad = h_vmem.shape[1]
        if d_pad == h_pad:
            h_vmem[...] = h_bf
        else:
            h_vmem[:, 0:h_pad] = h_bf
            h_vmem[:, h_pad:] = jnp.zeros(
                (h_vmem.shape[0], d_pad - h_pad), jnp.bfloat16)


def encoder_pooled(adj, x_pad, w1s, w2s, prms, pool_mat, *, n_true, tk,
                   vmem_budget):
    num_layers, d_pad, h_pad = w1s.shape
    n_pad = adj.shape[0]
    g = pool_mat.shape[0]
    kt = n_pad // tk

    flops = num_layers * (2 * n_pad * n_pad * d_pad
                          + 2 * n_pad * d_pad * h_pad
                          + 2 * n_pad * h_pad * h_pad
                          + 2 * g * n_pad * h_pad)
    adj_reads = 1 if tk == n_pad else num_layers
    bytes_accessed = (adj_reads * n_pad * n_pad * 2
                      + n_pad * d_pad * 2
                      + w1s.size * 2 + w2s.size * 2 + prms.size * 4
                      + g * n_pad * 2 + num_layers * g * h_pad * 4)

    grid_spec = pltpu.PrefetchScalarGridSpec(
        num_scalar_prefetch=0,
        grid=(num_layers, kt),
        in_specs=[
            # Adjacency: K-tiled; constant index when tk == n_pad => fetched
            # from HBM once and kept resident across all layers.
            pl.BlockSpec((n_pad, tk), lambda l, k: (0, k)),
            pl.BlockSpec((n_pad, d_pad), lambda l, k: (0, 0)),      # x (bf16)
            pl.BlockSpec((1, d_pad, h_pad), lambda l, k: (l, 0, 0)),  # w1[l]
            pl.BlockSpec((1, h_pad, h_pad), lambda l, k: (l, 0, 0)),  # w2[l]
            pl.BlockSpec((1, 8, h_pad), lambda l, k: (l, 0, 0)),      # params
            pl.BlockSpec((g, n_pad), lambda l, k: (0, 0)),            # pool
        ],
        out_specs=pl.BlockSpec((1, g, h_pad), lambda l, k: (l, 0, 0)),
        scratch_shapes=[pltpu.VMEM((n_pad, d_pad), jnp.bfloat16),
                        pltpu.VMEM((n_pad, d_pad), jnp.float32)],
    )
    # TODO(synk): add a "parallel" node-row grid axis (v7x megacore) with a
    # two-pass BatchNorm once graphs get large enough to matter.
    return pl.pallas_call(
        functools.partial(_encoder_kernel, n_true=n_true, tk=tk, h_pad=h_pad),
        grid_spec=grid_spec,
        out_shape=jax.ShapeDtypeStruct((num_layers, g, h_pad), jnp.float32),
        compiler_params=pltpu.CompilerParams(
            dimension_semantics=("arbitrary", "arbitrary"),
            vmem_limit_bytes=vmem_budget),
        cost_estimate=pl.CostEstimate(
            flops=flops, transcendentals=num_layers * h_pad,
            bytes_accessed=bytes_accessed),
    )(adj, x_pad, w1s, w2s, prms, pool_mat)


# ----------------------- fused concat + proj_head ---------------------------


def _proj_head_kernel(pooled_ref, w1_ref, b1_ref, w2_ref, b2_ref, o_ref,
                      *, num_layers):
    # concat(pooled) @ W1 expressed as a sum over per-layer slices of W1.
    h = b1_ref[...]
    for l in range(num_layers):
        h = h + jnp.dot(pooled_ref[l].astype(jnp.bfloat16), w1_ref[l],
                        preferred_element_type=jnp.float32)
    h = jnp.maximum(h, 0.0)
    o_ref[...] = jnp.dot(h.astype(jnp.bfloat16), w2_ref[...],
                         preferred_element_type=jnp.float32) + b2_ref[...]


def proj_head(pooled, pw1, pb1, pw2, pb2, *, vmem_budget):
    num_layers, g, h_pad = pooled.shape
    e_pad = pw1.shape[2]

    def full(shape):
        nd = len(shape)
        return pl.BlockSpec(shape, lambda: (0,) * nd)

    flops = 2 * g * h_pad * e_pad * num_layers + 2 * g * e_pad * e_pad
    bytes_accessed = (pooled.size * 4 + pw1.size * 2 + pw2.size * 2
                      + (pb1.size + pb2.size) * 4 + g * e_pad * 4)
    # TODO(synk): tile over the graph axis with a "parallel" grid once
    # num_graphs is large enough to need pipelining / megacore.
    return pl.pallas_call(
        functools.partial(_proj_head_kernel, num_layers=num_layers),
        out_shape=jax.ShapeDtypeStruct((g, e_pad), jnp.float32),
        in_specs=[full(pooled.shape), full(pw1.shape), full(pb1.shape),
                  full(pw2.shape), full(pb2.shape)],
        out_specs=full((g, e_pad)),
        compiler_params=pltpu.CompilerParams(vmem_limit_bytes=vmem_budget),
        cost_estimate=pl.CostEstimate(
            flops=flops, transcendentals=0, bytes_accessed=bytes_accessed),
    )(pooled, pw1, pb1, pw2, pb2)


# ------------------------------ parameter init ------------------------------


def _xavier_uniform(key, fan_in, fan_out):
    # torch.nn.init.xavier_uniform_ on Linear weight [out, in]; stored [in, out].
    bound = math.sqrt(6.0 / (fan_in + fan_out))
    return jax.random.uniform(
        key, (fan_in, fan_out), jnp.float32, minval=-bound, maxval=bound)


def init_params(key, num_features, hidden_dim, num_gc_layers):
    embedding_dim = hidden_dim * num_gc_layers
    params = {"encoder": [], "hidden_dim": hidden_dim,
              "embedding_dim": embedding_dim}
    for i in range(num_gc_layers):
        din = num_features if i == 0 else hidden_dim
        key, k1, k2 = jax.random.split(key, 3)
        params["encoder"].append({
            "w1": _xavier_uniform(k1, din, hidden_dim),
            "b1": jnp.zeros((hidden_dim,), jnp.float32),
            "b2": jnp.zeros((hidden_dim,), jnp.float32),
            "w2": _xavier_uniform(k2, hidden_dim, hidden_dim),
            "gamma": jnp.ones((hidden_dim,), jnp.float32),
            "beta": jnp.zeros((hidden_dim,), jnp.float32),
        })
    key, k1, k2 = jax.random.split(key, 3)
    params["proj_w1"] = _xavier_uniform(k1, embedding_dim, embedding_dim)
    params["proj_b1"] = jnp.zeros((embedding_dim,), jnp.float32)
    params["proj_w2"] = _xavier_uniform(k2, embedding_dim, embedding_dim)
    params["proj_b2"] = jnp.zeros((embedding_dim,), jnp.float32)
    return params


# -------------------------------- forward -----------------------------------


def simclr_forward(params, x, edge_index, batch, num_graphs):
    """Equivalent of simclr.forward(x, edge_index, batch, num_graphs) -> y."""
    n_true = int(batch.shape[0])
    if x is None:
        # TODO(synk): PyTorch path passes a 1-D ones vector to the external
        # Encoder; we use the standard (N, 1) feature convention here.
        x = jnp.ones((n_true, 1), jnp.float32)

    hidden = params["hidden_dim"]
    num_layers = len(params["encoder"])
    num_features = x.shape[1]

    h_pad = _round_up(hidden, LANE)
    f_pad = _round_up(num_features, LANE)
    d_pad = max(f_pad, h_pad)               # uniform padded feature width
    n_pad = _round_up(n_true, LANE)
    e = hidden * num_layers
    e_pad = _round_up(e, LANE)

    budget = _vmem_budget_bytes()
    tk = _plan_k_tile(n_pad, d_pad, h_pad, num_graphs, budget)

    # Dense (A + I) adjacency (self-loops on real nodes only); small integer
    # edge counts are exact in bf16.
    # TODO(synk): multigraph edge multiplicities > 256 lose exactness in bf16.
    # TODO(synk): on v7x an fp8(e4m3) adjacency would halve the dominant
    # HBM stream; kept bf16 for portability.
    src, dst = edge_index[0], edge_index[1]
    adj = jnp.zeros((n_pad, n_pad), jnp.float32).at[dst, src].add(1.0)
    diag = jnp.arange(n_true)
    adj = adj.at[diag, diag].add(1.0)
    adj = adj.astype(jnp.bfloat16)

    # One-hot pooling matrix (bf16, padded node columns stay exactly zero).
    batch_pad = jnp.full((n_pad,), -1, jnp.int32).at[:n_true].set(
        batch.astype(jnp.int32))
    pool_mat = (batch_pad[None, :]
                == jnp.arange(num_graphs, dtype=jnp.int32)[:, None]
                ).astype(jnp.bfloat16)

    # Node features: rows padded to n_pad, lanes to d_pad, bf16.
    x_pad = jnp.zeros((n_pad, d_pad), jnp.bfloat16)
    x_pad = x_pad.at[:n_true, :num_features].set(x.astype(jnp.bfloat16))

    # Stacked per-layer weights (zero padding keeps padded lanes exactly 0)
    # and packed (8, h_pad) per-layer param tensor: [b1; b2; gamma; beta; 0..].
    w1_list, w2_list, prm_list = [], [], []
    for layer in params["encoder"]:
        w1_list.append(_pad_2d(layer["w1"], d_pad, h_pad, jnp.bfloat16))
        w2_list.append(_pad_2d(layer["w2"], h_pad, h_pad, jnp.bfloat16))
        prm = jnp.zeros((8, h_pad), jnp.float32)
        prm = prm.at[0, :hidden].set(layer["b1"])
        prm = prm.at[1, :hidden].set(layer["b2"])
        prm = prm.at[2, :hidden].set(layer["gamma"])
        prm = prm.at[3, :hidden].set(layer["beta"])
        prm_list.append(prm)
    w1s = jnp.stack(w1_list)
    w2s = jnp.stack(w2_list)
    prms = jnp.stack(prm_list)

    pooled = encoder_pooled(adj, x_pad, w1s, w2s, prms, pool_mat,
                            n_true=n_true, tk=tk, vmem_budget=budget)

    # proj_head weights re-indexed onto the padded per-layer feature slots so
    # the kernel consumes the padded pooled blocks directly (no lane concat).
    pw1 = jnp.zeros((num_layers, h_pad, e_pad), jnp.bfloat16)
    for l in range(num_layers):
        blk = params["proj_w1"][l * hidden:(l + 1) * hidden, :]
        pw1 = pw1.at[l, :hidden, :e].set(blk.astype(jnp.bfloat16))
    pb1 = jnp.zeros((1, e_pad), jnp.float32).at[0, :e].set(params["proj_b1"])
    pw2 = _pad_2d(params["proj_w2"], e_pad, e_pad, jnp.bfloat16)
    pb2 = jnp.zeros((1, e_pad), jnp.float32).at[0, :e].set(params["proj_b2"])

    y_pad = proj_head(pooled, pw1, pb1, pw2, pb2, vmem_budget=budget)
    return y_pad[:, :e]


# ---------------------------------- main -------------------------------------


if __name__ == "__main__":
    num_nodes = 8
    num_features = 16
    hidden_dim = 32
    num_gc_layers = 2
    num_graphs = 2

    key = jax.random.PRNGKey(0)
    key, kx, kp = jax.random.split(key, 3)

    x = jax.random.normal(kx, (num_nodes, num_features), jnp.float32)

    # Two ring graphs of 4 nodes each (undirected -> both edge directions).
    edges = []
    nodes_per_graph = num_nodes // num_graphs
    for g in range(num_graphs):
        base = g * nodes_per_graph
        for i in range(nodes_per_graph):
            a = base + i
            b = base + (i + 1) % nodes_per_graph
            edges.append((a, b))
            edges.append((b, a))
    edge_index = jnp.asarray(edges, dtype=jnp.int32).T      # [2, E]
    batch = jnp.repeat(
        jnp.arange(num_graphs, dtype=jnp.int32), nodes_per_graph)  # [N]

    params = init_params(kp, num_features, hidden_dim, num_gc_layers)

    y = simclr_forward(params, x, edge_index, batch, num_graphs)
    jax.block_until_ready(y)
    assert y.shape == (num_graphs, hidden_dim * num_gc_layers)
    assert bool(jnp.all(jnp.isfinite(y)))
    print("KERNEL_OK")
</pallas_src>

<mosaic_0001>
module attributes {stable_mosaic.version = 11 : i64} {
  func.func @_encoder_kernel(%arg0: i32, %arg1: i32, %arg2: memref<128x128xbf16, #tpu.memory_space<vmem>>, %arg3: memref<128x128xbf16, #tpu.memory_space<vmem>>, %arg4: memref<1x128x128xbf16, #tpu.memory_space<vmem>>, %arg5: memref<1x128x128xbf16, #tpu.memory_space<vmem>>, %arg6: memref<1x8x128xf32, #tpu.memory_space<vmem>>, %arg7: memref<2x128xbf16, #tpu.memory_space<vmem>>, %arg8: memref<1x2x128xf32, #tpu.memory_space<vmem>>, %arg9: memref<128x128xbf16, #tpu.memory_space<vmem>>, %arg10: memref<128x128xf32, #tpu.memory_space<vmem>>) attributes {dimension_semantics = [#tpu.dimension_semantics<arbitrary>, #tpu.dimension_semantics<arbitrary>], iteration_bounds = array<i64: 2, 1>, scalar_prefetch = 0 : i64, scratch_operands = 2 : i64, tpu.core_type = #tpu.core_type<tc>, window_params = [{transform_indices = @transform_0, window_bounds = array<i64: 128, 128>}, {pipeline_mode = #tpu.pipeline_mode<synchronous>, transform_indices = @transform_1, window_bounds = array<i64: 128, 128>}, {transform_indices = @transform_2, window_bounds = array<i64: 1, 128, 128>}, {transform_indices = @transform_3, window_bounds = array<i64: 1, 128, 128>}, {transform_indices = @transform_4, window_bounds = array<i64: 1, 8, 128>}, {pipeline_mode = #tpu.pipeline_mode<synchronous>, transform_indices = @transform_5, window_bounds = array<i64: 2, 128>}, {transform_indices = @transform_6, window_bounds = array<i64: 1, 2, 128>}]} {
    %c0_i32 = arith.constant 0 : i32
    %0 = arith.cmpi eq, %arg0, %c0_i32 : i32
    %c0_i32_0 = arith.constant 0 : i32
    %1 = arith.cmpi eq, %arg1, %c0_i32_0 : i32
    %2 = arith.andi %0, %1 : i1
    %3 = arith.extui %2 : i1 to i32
    %c0_i32_1 = arith.constant 0 : i32
    %4 = arith.cmpi ne, %3, %c0_i32_1 : i32
    scf.if %4 {
      %c0_12 = arith.constant 0 : index
      %c0_13 = arith.constant 0 : index
      %20 = vector.load %arg3[%c0_12, %c0_13] : memref<128x128xbf16, #tpu.memory_space<vmem>>, vector<128x128xbf16>
      %c0_14 = arith.constant 0 : index
      %c0_15 = arith.constant 0 : index
      %21 = vector.load %arg9[%c0_14, %c0_15] : memref<128x128xbf16, #tpu.memory_space<vmem>>, vector<128x128xbf16>
      tpu.vector_store %arg9[%c0_14, %c0_15], %20 {strides = array<i32>} : memref<128x128xbf16, #tpu.memory_space<vmem>>, vector<128x128xbf16>,
    } else {
    }
    %c0_i32_2 = arith.constant 0 : i32
    %5 = arith.cmpi eq, %arg1, %c0_i32_2 : i32
    %6 = arith.extui %5 : i1 to i32
    %c0_i32_3 = arith.constant 0 : i32
    %7 = arith.cmpi ne, %6, %c0_i32_3 : i32
    scf.if %7 {
      %cst_12 = arith.constant 0.000000e+00 : f32
      %20 = vector.broadcast %cst_12 : f32 to vector<128x128xf32>
      %c0_13 = arith.constant 0 : index
      %c0_14 = arith.constant 0 : index
      %21 = vector.load %arg10[%c0_13, %c0_14] : memref<128x128xf32, #tpu.memory_space<vmem>>, vector<128x128xf32>
      tpu.vector_store %arg10[%c0_13, %c0_14], %20 {strides = array<i32>} : memref<128x128xf32, #tpu.memory_space<vmem>>, vector<128x128xf32>,
    } else {
    }
    %c128_i32 = arith.constant 128 : i32
    %8 = arith.muli %arg1, %c128_i32 : i32
    %9 = tpu.assume_multiple %8, 128 : i32
    %10 = arith.index_cast %9 : i32 to index
    %c0 = arith.constant 0 : index
    %11 = vector.load %arg9[%10, %c0] : memref<128x128xbf16, #tpu.memory_space<vmem>>, vector<128x128xbf16>
    %c0_4 = arith.constant 0 : index
    %c0_5 = arith.constant 0 : index
    %12 = vector.load %arg10[%c0_4, %c0_5] : memref<128x128xf32, #tpu.memory_space<vmem>>, vector<128x128xf32>
    %c0_6 = arith.constant 0 : index
    %c0_7 = arith.constant 0 : index
    %13 = vector.load %arg2[%c0_6, %c0_7] : memref<128x128xbf16, #tpu.memory_space<vmem>>, vector<128x128xbf16>
    %cst = arith.constant dense<0.000000e+00> : vector<128x128xf32>
    %14 = tpu.matmul %13, %11, %cst {dimension_numbers = #tpu.dot_dimension_numbers<[1], [0], [0], [1], [0, 0, 1, 1], [], []>} : vector<128x128xbf16>, vector<128x128xbf16>, vector<128x128xf32> -> vector<128x128xf32>
    %15 = arith.addf %12, %14 : vector<128x128xf32>
    %c0_8 = arith.constant 0 : index
    %c0_9 = arith.constant 0 : index
    %16 = vector.load %arg10[%c0_8, %c0_9] : memref<128x128xf32, #tpu.memory_space<vmem>>, vector<128x128xf32>
    tpu.vector_store %arg10[%c0_8, %c0_9], %15 {strides = array<i32>} : memref<128x128xf32, #tpu.memory_space<vmem>>, vector<128x128xf32>,
    %c0_i32_10 = arith.constant 0 : i32
    %17 = arith.cmpi eq, %arg1, %c0_i32_10 : i32
    %18 = arith.extui %17 : i1 to i32
    %c0_i32_11 = arith.constant 0 : i32
    %19 = arith.cmpi ne, %18, %c0_i32_11 : i32
    scf.if %19 {
      %c0_12 = arith.constant 0 : index
      %c0_13 = arith.constant 0 : index
      %c0_14 = arith.constant 0 : index
      %20 = vector.load %arg6[%c0_12, %c0_13, %c0_14] : memref<1x8x128xf32, #tpu.memory_space<vmem>>, vector<1x1x128xf32>
      %21 = vector.shape_cast %20 : vector<1x1x128xf32> to vector<1x128xf32>
      %c0_15 = arith.constant 0 : index
      %c1 = arith.constant 1 : index
      %c0_16 = arith.constant 0 : index
      %22 = vector.load %arg6[%c0_15, %c1, %c0_16] : memref<1x8x128xf32, #tpu.memory_space<vmem>>, vector<1x1x128xf32>
      %23 = vector.shape_cast %22 : vector<1x1x128xf32> to vector<1x128xf32>
      %c0_17 = arith.constant 0 : index
      %c2 = arith.constant 2 : index
      %c0_18 = arith.constant 0 : index
      %24 = vector.load %arg6[%c0_17, %c2, %c0_18] : memref<1x8x128xf32, #tpu.memory_space<vmem>>, vector<1x1x128xf32>
      %25 = vector.shape_cast %24 : vector<1x1x128xf32> to vector<1x128xf32>
      %c0_19 = arith.constant 0 : index
      %c3 = arith.constant 3 : index
      %c0_20 = arith.constant 0 : index
      %26 = vector.load %arg6[%c0_19, %c3, %c0_20] : memref<1x8x128xf32, #tpu.memory_space<vmem>>, vector<1x1x128xf32>
      %27 = vector.shape_cast %26 : vector<1x1x128xf32> to vector<1x128xf32>
      %c0_21 = arith.constant 0 : index
      %c0_22 = arith.constant 0 : index
      %28 = vector.load %arg10[%c0_21, %c0_22] : memref<128x128xf32, #tpu.memory_space<vmem>>, vector<128x128xf32>
      %29 = arith.truncf %28 : vector<128x128xf32> to vector<128x128xbf16>
      %c0_23 = arith.constant 0 : index
      %c0_24 = arith.constant 0 : index
      %c0_25 = arith.constant 0 : index
      %30 = vector.load %arg4[%c0_23, %c0_24, %c0_25] : memref<1x128x128xbf16, #tpu.memory_space<vmem>>, vector<1x128x128xbf16>
      %31 = vector.shape_cast %30 : vector<1x128x128xbf16> to vector<128x128xbf16>
      %cst_26 = arith.constant dense<0.000000e+00> : vector<128x128xf32>
      %32 = tpu.matmul %29, %31, %cst_26 {dimension_numbers = #tpu.dot_dimension_numbers<[1], [0], [0], [1], [0, 0, 1, 1], [], []>} : vector<128x128xbf16>, vector<128x128xbf16>, vector<128x128xf32> -> vector<128x128xf32>
      %33 = vector.broadcast %21 : vector<1x128xf32> to vector<128x128xf32>
      %34 = arith.addf %32, %33 : vector<128x128xf32>
      %cst_27 = arith.constant 0.000000e+00 : f32
      %35 = vector.broadcast %cst_27 : f32 to vector<128x128xf32>
      %36 = arith.maximumf %34, %35 : vector<128x128xf32>
      %37 = arith.truncf %36 : vector<128x128xf32> to vector<128x128xbf16>
      %c0_28 = arith.constant 0 : index
      %c0_29 = arith.constant 0 : index
      %c0_30 = arith.constant 0 : index
      %38 = vector.load %arg5[%c0_28, %c0_29, %c0_30] : memref<1x128x128xbf16, #tpu.memory_space<vmem>>, vector<1x128x128xbf16>
      %39 = vector.shape_cast %38 : vector<1x128x128xbf16> to vector<128x128xbf16>
      %cst_31 = arith.constant dense<0.000000e+00> : vector<128x128xf32>
      %40 = tpu.matmul %37, %39, %cst_31 {dimension_numbers = #tpu.dot_dimension_numbers<[1], [0], [0], [1], [0, 0, 1, 1], [], []>} : vector<128x128xbf16>, vector<128x128xbf16>, vector<128x128xf32> -> vector<128x128xf32>
      %41 = vector.broadcast %23 : vector<1x128xf32> to vector<128x128xf32>
      %42 = arith.addf %40, %41 : vector<128x128xf32>
      %cst_32 = arith.constant 0.000000e+00 : f32
      %43 = vector.broadcast %cst_32 : f32 to vector<128x128xf32>
      %44 = arith.maximumf %42, %43 : vector<128x128xf32>
      %45 = tpu.iota {dimensions = array<i32: 0>} : vector<128x128xi32>
      %c8_i32 = arith.constant 8 : i32
      %46 = vector.broadcast %c8_i32 : i32 to vector<128x128xi32>
      %47 = arith.cmpi slt, %45, %46 : vector<128x128xi32>
      %48 = arith.extui %47 : vector<128x128xi1> to vector<128x128xi32>
      %49 = arith.sitofp %48 : vector<128x128xi32> to vector<128x128xf32>
      %50 = arith.mulf %44, %49 : vector<128x128xf32>
      %cst_33 = arith.constant dense<0.000000e+00> : vector<128xf32>
      %51 = vector.multi_reduction <add>, %50, %cst_33 [0] : vector<128x128xf32> to vector<128xf32>
      %52 = vector.shape_cast %51 : vector<128xf32> to vector<1x128xf32>
      %cst_34 = arith.constant 1.250000e-01 : f32
      %53 = vector.broadcast %cst_34 : f32 to vector<1x128xf32>
      %54 = arith.mulf %52, %53 : vector<1x128xf32>
      %55 = arith.mulf %50, %50 : vector<128x128xf32>
      %cst_35 = arith.constant dense<0.000000e+00> : vector<128xf32>
      %56 = vector.multi_reduction <add>, %55, %cst_35 [0] : vector<128x128xf32> to vector<128xf32>
      %57 = vector.shape_cast %56 : vector<128xf32> to vector<1x128xf32>
      %cst_36 = arith.constant 1.250000e-01 : f32
      %58 = vector.broadcast %cst_36 : f32 to vector<1x128xf32>
      %59 = arith.mulf %57, %58 : vector<1x128xf32>
      %60 = arith.mulf %54, %54 : vector<1x128xf32>
      %61 = arith.subf %59, %60 : vector<1x128xf32>
      %cst_37 = arith.constant 0.000000e+00 : f32
      %62 = vector.broadcast %cst_37 : f32 to vector<1x128xf32>
      %63 = arith.maximumf %61, %62 : vector<1x128xf32>
      %64 = vector.broadcast %54 : vector<1x128xf32> to vector<128x128xf32>
      %65 = arith.subf %44, %64 : vector<128x128xf32>
      %cst_38 = arith.constant 9.99999974E-6 : f32
      %66 = vector.broadcast %cst_38 : f32 to vector<1x128xf32>
      %67 = arith.addf %63, %66 : vector<1x128xf32>
      %68 = math.rsqrt %67 : vector<1x128xf32>
      %69 = vector.broadcast %68 : vector<1x128xf32> to vector<128x128xf32>
      %70 = arith.mulf %65, %69 : vector<128x128xf32>
      %71 = vector.broadcast %25 : vector<1x128xf32> to vector<128x128xf32>
      %72 = arith.mulf %70, %71 : vector<128x128xf32>
      %73 = vector.broadcast %27 : vector<1x128xf32> to vector<128x128xf32>
      %74 = arith.addf %72, %73 : vector<128x128xf32>
      %75 = arith.truncf %74 : vector<128x128xf32> to vector<128x128xbf16>
      %c0_39 = arith.constant 0 : index
      %c0_40 = arith.constant 0 : index
      %76 = vector.load %arg7[%c0_39, %c0_40] : memref<2x128xbf16, #tpu.memory_space<vmem>>, vector<2x128xbf16>
      %cst_41 = arith.constant dense<0.000000e+00> : vector<2x128xf32>
      %77 = tpu.matmul %76, %75, %cst_41 {dimension_numbers = #tpu.dot_dimension_numbers<[1], [0], [0], [1], [0, 0, 1, 1], [], []>} : vector<2x128xbf16>, vector<128x128xbf16>, vector<2x128xf32> -> vector<2x128xf32>
      %c0_42 = arith.constant 0 : index
      %c0_43 = arith.constant 0 : index
      %c0_44 = arith.constant 0 : index
      %78 = vector.load %arg8[%c0_42, %c0_43, %c0_44] : memref<1x2x128xf32, #tpu.memory_space<vmem>>, vector<1x2x128xf32>
      %79 = vector.shape_cast %78 : vector<1x2x128xf32> to vector<2x128xf32>
      %80 = vector.shape_cast %77 : vector<2x128xf32> to vector<1x2x128xf32>
      tpu.vector_store %arg8[%c0_42, %c0_43, %c0_44], %80 {strides = array<i32>} : memref<1x2x128xf32, #tpu.memory_space<vmem>>, vector<1x2x128xf32>,
      %c0_45 = arith.constant 0 : index
      %c0_46 = arith.constant 0 : index
      %81 = vector.load %arg9[%c0_45, %c0_46] : memref<128x128xbf16, #tpu.memory_space<vmem>>, vector<128x128xbf16>
      tpu.vector_store %arg9[%c0_45, %c0_46], %75 {strides = array<i32>} : memref<128x128xbf16, #tpu.memory_space<vmem>>, vector<128x128xbf16>,
    } else {
    }
    return
  }
  func.func @transform_0(%arg0: i32, %arg1: i32) -> (i32, i32) {
    %c0_i32 = arith.constant 0 : i32
    %c0_i32_0 = arith.constant 0 : i32
    return %c0_i32, %arg1 : i32, i32
  }
  func.func @transform_1(%arg0: i32, %arg1: i32) -> (i32, i32) {
    %c0_i32 = arith.constant 0 : i32
    %c0_i32_0 = arith.constant 0 : i32
    %c0_i32_1 = arith.constant 0 : i32
    return %c0_i32, %c0_i32_0 : i32, i32
  }
  func.func @transform_2(%arg0: i32, %arg1: i32) -> (i32, i32, i32) {
    %c0_i32 = arith.constant 0 : i32
    %c0_i32_0 = arith.constant 0 : i32
    %c0_i32_1 = arith.constant 0 : i32
    return %arg0, %c0_i32, %c0_i32_0 : i32, i32, i32
  }
  func.func @transform_3(%arg0: i32, %arg1: i32) -> (i32, i32, i32) {
    %c0_i32 = arith.constant 0 : i32
    %c0_i32_0 = arith.constant 0 : i32
    %c0_i32_1 = arith.constant 0 : i32
    return %arg0, %c0_i32, %c0_i32_0 : i32, i32, i32
  }
  func.func @transform_4(%arg0: i32, %arg1: i32) -> (i32, i32, i32) {
    %c0_i32 = arith.constant 0 : i32
    %c0_i32_0 = arith.constant 0 : i32
    %c0_i32_1 = arith.constant 0 : i32
    return %arg0, %c0_i32, %c0_i32_0 : i32, i32, i32
  }
  func.func @transform_5(%arg0: i32, %arg1: i32) -> (i32, i32) {
    %c0_i32 = arith.constant 0 : i32
    %c0_i32_0 = arith.constant 0 : i32
    %c0_i32_1 = arith.constant 0 : i32
    return %c0_i32, %c0_i32_0 : i32, i32
  }
  func.func @transform_6(%arg0: i32, %arg1: i32) -> (i32, i32, i32) {
    %c0_i32 = arith.constant 0 : i32
    %c0_i32_0 = arith.constant 0 : i32
    %c0_i32_1 = arith.constant 0 : i32
    return %arg0, %c0_i32, %c0_i32_0 : i32, i32, i32
  }
}

</mosaic_0001>

<bundles_post_ra>
// kernel: tpu_custom_call.1
= control target key start
LH: loop header
LB: loop body
LE: loop exit
PB: predicated region body
PF: predicated region fallthrough
CT: control target
= control target key end

     0   :  { %s2682_s0 = inlined_call_operand.hbm [shape: bf16[128,128], index: 0, kind: input, shape index: {}]   ;;  %s2683_s1 = inlined_call_operand.hbm [shape: bf16[128,128], index: 1, kind: input, shape index: {}]   ;;  %s2684_s2 = inlined_call_operand.hbm [shape: bf16[2,128,128], index: 2, kind: input, shape index: {}]   ;;  %s2685_s3 = inlined_call_operand.hbm [shape: bf16[2,128,128], index: 3, kind: input, shape index: {}]   ;;  %s2686_s4 = inlined_call_operand.hbm [shape: f32[2,8,128], index: 4, kind: input, shape index: {}]   ;;  %s2687_s5 = inlined_call_operand.vmem [shape: bf16[2,128], index: 5, kind: input, shape index: {}]   ;;  %s2688_s6 = inlined_call_operand.hbm [shape: f32[2,2,128], index: 6, kind: output, shape index: {}]  }
   0x1   :  { %2706 = sst [smem:[#allocation20_spill]] %s2682_s0 }
   0x2   :  { %2707 = sst [smem:[#allocation21_spill]] %s2684_s2 }
   0x3   :  { %2708 = sst [smem:[#allocation22_spill]] %s2687_s5 }
   0x4   :  { %2709 = sst [smem:[#allocation23_spill]] %s2688_s6 }
   0x5   :  { %11 = vsyncpa [#allocation5], 0 }
   0x6   :  { %12 = vsyncpa [#allocation8], 0 }
   0x7   :  { %13 = vsyncpa [#allocation6], 0 }
   0x8   :  { %15 = vsyncpa [#allocation6 + $0x1], 0  ;;  %s2191_s21 = smov 0   ;;  %s2193_s22 = smov 0  }
   0x9   :  { %s2195_s23 = smov 0   ;;  %s2197_s24 = smov 0  }
   0xa   :  { %s2199_s25 = smov 0   ;;  %s2201_s26 = smov 0  }
   0xb LB: > { %2710 = sst [smem:[#allocation17_spill]] %s2124_s21  ;;  %s2222_s27 = sadd.s32 4294967295, %s2144_s26   ;;  %s2144_s26 = sphi %s2201_s26, %s21_s26   ;;  %s2140_s25 = sphi %s2199_s25, %s2750_s25   ;;  %s2136_s24 = sphi %s2197_s24, %s2749_s24   ;;  %s2132_s23 = sphi %s2195_s23, %s2748_s23   ;;  %s2128_s22 = sphi %s2193_s22, %s2747_s22   ;;  %s2124_s21 = sphi %s2191_s21, %s2746_s21  }
   0xc   : > { %s1540_s28 = sadd.s32 4294967294, %s2144_s26   ;;  %p94_p0 = scmp.ne.s32.totalorder %s2132_s23, %s2128_s22 }
   0xd   : > { %p95_p1 = scmp.eq.s32.totalorder %s2144_s26, 0  ;;  %p100_p2 = scmp.ne.s32.totalorder %s2128_s22, %s2124_s21 }
   0xe   : > { %p2689_p3 = scmp.eq.s32.totalorder %s2222_s27, 0  ;;  %p197_p4 = scmp.eq.s32.totalorder %s2222_s27, 1 }
   0xf   : > { %p2233_p5 = por %p95_p1, %p94_p0  ;;  %p203_p6 = scmp.eq.s32.totalorder %s1540_s28, 1 }
  0x10   : > { %p2239_p7 = por %p2689_p3, %p100_p2  ;;  %p2243_p8 = por %p197_p4, %p94_p0 }
  0x11   : > { %p2247_p9 = por %p203_p6, %p100_p2  ;;  %p1541_p10 = scmp.ge.s32.totalorder %s2144_s26, 1 }
  0x12   : > { %s2712_s7 = scalar_select %p2239_p7, 1, 0 }
  0x13   : > { %s2713_s8 = scalar_select %p2243_p8, 1, 0 }
  0x14   : > { %s2715_s9 = scalar_select %p2247_p9, 1, 0 }
  0x15   : > { %2714 = sst [smem:[#allocation18_spill]] %s2713_s8  ;;  %p210_p11 = scmp.lt.s32.totalorder %s2144_s26, 3 }
  0x16   : > { %2716 = sst [smem:[#allocation19_spill]] %s2715_s9  ;;  %s2146_s11 = smov [#allocation4]  }
  0x17   : > { %p2253_p12 = pnand %p1541_p10, %p210_p11  ;;  %s224_s12 = sshll.u32 %s2146_s11, 4  ;;  %s2257_s12 = int_to_ptr.vmem [resolvable:$true] %s224_s12 }
  0x18   : > { %p1816_p1 = scmp.lt.s32.totalorder %s2144_s26, 2  ;;  %s33_s15 = sadd.s32 1, %s2140_s25 }
  0x19   : > { %s2717_s10 = scalar_select %p2253_p12, 1, 0 }
  0x1a   : > { %p1793_p13 = pneg %p2253_p12  ;;  %p2271_p4 = pnand %p1816_p1, %p2233_p5 }
  0x1b   : > { %p2276_p6 = scmp.ge.s32.totalorder %s33_s15, 2  ;;  %s2721_s0 = sld [smem:[#allocation20_spill]] }
  0x1c   : > { %p2265_p2 = pnand %p1793_p13, %p2689_p3 }
  0x1d   : > { %s2719_s14 = scalar_select %p2271_p4, 1, 0 }
  0x1e   : > { %s2718_s13 = scalar_select %p2265_p2, 1, 0 }
  0x1f   : > { %p2700_p11 = pneg %p2265_p2 }
  0x21   : > { %s1908_s19 = scalar_lea.hbm %s2721_s0, 1024 }
  0x22   : > { %p1909_p10 = scmp.ne.s32.totalorder %s2721_s0, %s1908_s19  ;;  %p1915_p1 = scmp.lt.u32.totalorder %s1908_s19, %s2721_s0 }
  0x24   : > { %p1911_p5 = pnand %p2700_p11, %p1909_p10 }
  0x26   : > { %p1912_p13 = pneg %p1911_p5 }
  0x28   : > { %p1917_p0 = pnand %p1915_p1, %p1912_p13 }
  0x2a   : > { %1920 = shalt.err (!%p1917_p0)
}
  0x2b   : > { %s1921_s17 = scalar_lea.vmem %s2257_s12, 1024  ;;  %p1929_p7 = scmp.lt.s32.totalorder %s2257_s12, %s2257_s12 }
  0x2c   : > { %p1922_p3 = scmp.ne.s32.totalorder %s2257_s12, %s1921_s17  ;;  %p1930_p10 = scmp.lt.s32.totalorder %s1921_s17, %s1921_s17 }
  0x2e   : > { %p1924_p9 = pnand %p1922_p3, %p2700_p11  ;;  %p1931_p5 = por %p1930_p10, %p1929_p7 }
  0x30   : > { %p1925_p8 = pneg %p1924_p9 }
  0x32   : > { %p1932_p12 = pnand %p1931_p5, %p1925_p8 }
  0x34   : > { %1935 = shalt.err (!%p1932_p12)
}
  0x35   : > { %s2147_s18 = smov 64   ;;  %s2148_s19 = smov 4  }
  0x36   : > { %1796 = dma.hbm_to_vmem [thread:$0]  (!%p2265_p2), %s2721_s0, 1024, %s2257_s12, [#allocation5], %s2147_s18, %s2147_s18, %s2148_s19  }
  0x37   : > { %s254_s30 = sand.u32 1, %s2144_s26   ;;  %s2752_s15 = smov (%p2276_p6, %s33_s15), 0 }
  0x38   : > { %s2698_s11 = sand.u32 1, %s2132_s23   ;;  %s84_s17 = ssub.s32 %s2140_s25, %s2752_s15 }
  0x39   : > { %s2320_s29 = sshll.u32 %s2698_s11, 6  ;;  %p85_p3 = scmp.eq.s32.totalorder %s84_s17, 0 }
  0x3a   : > { %s2699_s9 = sshll.u32 %s2140_s25, 10  ;;  %s258_s21 = scalar_lea.vmem [#allocation9], %s2320_s29 }
  0x3b   : > { %s265_s6 = sshll.u32 %s258_s21, 4  ;;  %s2722_s5 = sadd.s32 1, %s2132_s23  ;;  %s2336_s6 = int_to_ptr.vmem [resolvable:$true] %s265_s6 }
  0x3c   : > { %s2327_s8 = scalar_select %p85_p3, %s2132_s23, %s2722_s5  }
  0x3d   : > { %s2723_s2 = sld [smem:[#allocation21_spill]]  ;;  %s2338_s28 = scalar_lea.sflag [#allocation5], %s254_s30 }
  0x3e   : > { %p2344_p8 = pneg %p2271_p4 }
  0x40   : > { %s2724_s5 = scalar_select %p2344_p8, 1, 0 }
  0x43   : > { %s2334_s16 = scalar_lea.hbm %s2723_s2, %s2699_s9  ;;  %s1941_s20 = scalar_lea.hbm %s2723_s2, 2048 }
  0x44   : > { %s1936_s17 = scalar_lea.hbm %s2334_s16, 1024  ;;  %p1942_p0 = scmp.lt.u32.totalorder %s2334_s16, %s2723_s2 }
  0x45   : > { %p1937_p7 = scmp.ne.s32.totalorder %s2334_s16, %s1936_s17  ;;  %p1943_p6 = scmp.lt.u32.totalorder %s1941_s20, %s1936_s17 }
  0x46   : > { %p1945_p1 = scmp.lt.u32.totalorder %s1936_s17, %s2334_s16 }
  0x47   : > { %p1939_p9 = pnand %p2344_p8, %p1937_p7  ;;  %p1944_p13 = por %p1943_p6, %p1942_p0 }
  0x49   : > { %p1940_p12 = pneg %p1939_p9  ;;  %p1946_p10 = por %p1945_p1, %p1944_p13 }
  0x4b   : > { %p1947_p5 = pnand %p1946_p10, %p1940_p12 }
  0x4d   : > { %1950 = shalt.err (!%p1947_p5)
}
  0x4e   : > { %s1951_s30 = scalar_lea.vmem %s2336_s6, 1024  ;;  %s2149_s21 = smov [#allocation9]  }
  0x4f   : > { %p1952_p3 = scmp.ne.s32.totalorder %s2336_s6, %s1951_s30  ;;  %s1956_s12 = sshll.u32 %s2149_s21, 4  ;;  %s1957_s12 = int_to_ptr.vmem [resolvable:$false] %s1956_s12 }
  0x50   : > { %s1958_s9 = scalar_lea.vmem %s1957_s12, 2048  ;;  %p1959_p11 = scmp.lt.s32.totalorder %s2336_s6, %s1957_s12 }
  0x51   : > { %p1954_p7 = pnand %p1952_p3, %p2344_p8  ;;  %p1960_p2 = scmp.lt.s32.totalorder %s1958_s9, %s1951_s30 }
  0x53   : > { %p1955_p9 = pneg %p1954_p7  ;;  %p1961_p0 = por %p1960_p2, %p1959_p11 }
  0x55   : > { %p1962_p6 = pnand %p1961_p0, %p1955_p9 }
  0x57   : > { %1965 = shalt.err (!%p1962_p6)
}
  0x58   : > { %1803 = dma.hbm_to_vmem [thread:$0]  (!%p2271_p4), %s2334_s16, 1024, %s2336_s6, %s2338_s28, %s2147_s18, %s2147_s18, %s2148_s19  }
  0x59   : > { %s2725_s11 = sshll.u32 %s2140_s25, 10  ;;  %s279_s21 = scalar_lea.vmem [#allocation10], %s2320_s29 }
  0x5a   : > { %s2376_s30 = scalar_lea.hbm %s2685_s3, %s2725_s11  ;;  %s286_s12 = sshll.u32 %s279_s21, 4  ;;  %s2379_s12 = int_to_ptr.vmem [resolvable:$true] %s286_s12 }
  0x5b   : > { %s2150_s9 = smov [#allocation7]   ;;  %s1966_s2 = scalar_lea.hbm %s2376_s30, 1024 }
  0x5c   : > { %s2381_s0 = sshll.u32 %s2150_s9, 4  ;;  %p1967_p2 = scmp.ne.s32.totalorder %s2376_s30, %s1966_s2  ;;  %s238_s0 = int_to_ptr.vmem [resolvable:$true] %s2381_s0 }
  0x5d   : > { %s1971_s11 = scalar_lea.hbm %s2685_s3, 2048  ;;  %p1972_p13 = scmp.lt.u32.totalorder %s2376_s30, %s2685_s3 }
  0x5e   : > { %p1969_p11 = pnand %p1967_p2, %p2344_p8  ;;  %p1973_p1 = scmp.lt.u32.totalorder %s1971_s11, %s1966_s2 }
  0x5f   : > { %p1975_p5 = scmp.lt.u32.totalorder %s1966_s2, %s2376_s30 }
  0x60   : > { %p1970_p12 = pneg %p1969_p11  ;;  %p1974_p10 = por %p1973_p1, %p1972_p13 }
  0x62   : > { %p1976_p3 = por %p1975_p5, %p1974_p10 }
  0x64   : > { %p1977_p7 = pnand %p1976_p3, %p1970_p12 }
  0x66   : > { %1980 = shalt.err (!%p1977_p7)
}
  0x67   : > { %s1981_s29 = scalar_lea.vmem %s2379_s12, 1024  ;;  %s2151_s21 = smov [#allocation10]  }
  0x68   : > { %p1982_p9 = scmp.ne.s32.totalorder %s2379_s12, %s1981_s29  ;;  %s1986_s9 = sshll.u32 %s2151_s21, 4  ;;  %s1987_s9 = int_to_ptr.vmem [resolvable:$false] %s1986_s9 }
  0x69   : > { %s1988_s6 = scalar_lea.vmem %s1987_s9, 2048  ;;  %p1989_p2 = scmp.lt.s32.totalorder %s2379_s12, %s1987_s9 }
  0x6a   : > { %p1984_p0 = pnand %p1982_p9, %p2344_p8  ;;  %p1990_p11 = scmp.lt.s32.totalorder %s1988_s6, %s1981_s29 }
  0x6c   : > { %p1985_p6 = pneg %p1984_p0  ;;  %p1991_p13 = por %p1990_p11, %p1989_p2 }
  0x6e   : > { %p1992_p1 = pnand %p1991_p13, %p1985_p6 }
  0x70   : > { %1995 = shalt.err (!%p1992_p1)
}
  0x71   : > { %1806 = dma.hbm_to_vmem [thread:$0]  (!%p2271_p4), %s2376_s30, 1024, %s2379_s12, %s2338_s28, %s2147_s18, %s2147_s18, %s2148_s19  }
  0x72   : > { %s2726_s2 = sand.u32 1, %s2132_s23   ;;  %s1996_s20 = scalar_lea.hbm %s2683_s1, 1024 }
  0x73   : > { %s1551_s16 = sshll.u32 %s2726_s2, 3  ;;  %p1997_p12 = scmp.ne.s32.totalorder %s2683_s1, %s1996_s20 }
  0x74   : > { %p2727_p10 = scmp.ne.s32.totalorder %s2718_s13, 0  ;;  %p2003_p9 = scmp.lt.u32.totalorder %s1996_s20, %s2683_s1 }
  0x76   : > { %p2728_p5 = pneg %p2727_p10 }
  0x78   : > { %p1999_p3 = pnand %p1997_p12, %p2728_p5 }
  0x7a   : > { %p2000_p7 = pneg %p1999_p3 }
  0x7c   : > { %p2005_p0 = pnand %p2003_p9, %p2000_p7 }
  0x7e   : > { %2008 = shalt.err (!%p2005_p0)
}
  0x7f   : > { %s2009_s30 = scalar_lea.vmem %s238_s0, 1024  ;;  %p2729_p2 = pmov %p2728_p5 }
  0x80   : > { %p2010_p6 = scmp.ne.s32.totalorder %s238_s0, %s2009_s30  ;;  %p2017_p1 = scmp.lt.s32.totalorder %s238_s0, %s238_s0 }
  0x81   : > { %p2018_p4 = scmp.lt.s32.totalorder %s2009_s30, %s2009_s30 }
  0x82   : > { %p2012_p11 = pnand %p2010_p6, %p2729_p2 }
  0x83   : > { %p2019_p8 = por %p2018_p4, %p2017_p1 }
  0x84   : > { %p2013_p13 = pneg %p2012_p11 }
  0x86   : > { %p2020_p5 = pnand %p2019_p8, %p2013_p13 }
  0x88   : > { %2023 = shalt.err (!%p2020_p5)
}
  0x89   : > { %1799 = dma.hbm_to_vmem [thread:$0]  (!%p2727_p10), %s2683_s1, 1024, %s238_s0, [#allocation8], %s2147_s18, %s2147_s18, %s2148_s19  }
  0x8a   : > { %s1552_s11 = sshll.u32 %s2140_s25, 7  ;;  %s300_s13 = scalar_lea.vmem [#allocation11], %s1551_s16 }
  0x8b   : > { %s2438_s29 = scalar_lea.hbm %s2686_s4, %s1552_s11  ;;  %s307_s21 = sshll.u32 %s300_s13, 4  ;;  %s308_s21 = int_to_ptr.vmem [resolvable:$true] %s307_s21 }
  0x8c   : > { %s2024_s9 = scalar_lea.hbm %s2438_s29, 128  ;;  %p2730_p8 = scmp.ne.s32.totalorder %s2724_s5, 0 }
  0x8d   : > { %p2025_p4 = scmp.ne.s32.totalorder %s2438_s29, %s2024_s9  ;;  %s2029_s18 = scalar_lea.hbm %s2686_s4, 256 }
  0x8e   : > { %p2030_p10 = scmp.lt.u32.totalorder %s2438_s29, %s2686_s4  ;;  %p2031_p7 = scmp.lt.u32.totalorder %s2029_s18, %s2024_s9 }
  0x8f   : > { %p2027_p12 = pnand %p2025_p4, %p2730_p8  ;;  %p2033_p0 = scmp.lt.u32.totalorder %s2024_s9, %s2438_s29 }
  0x90   : > { %p2032_p9 = por %p2031_p7, %p2030_p10 }
  0x91   : > { %p2028_p3 = pneg %p2027_p12 }
  0x92   : > { %p2034_p6 = por %p2033_p0, %p2032_p9 }
  0x94   : > { %p2035_p2 = pnand %p2034_p6, %p2028_p3 }
  0x96   : > { %2038 = shalt.err (!%p2035_p2)
}
  0x97   : > { %s2039_s16 = scalar_lea.vmem %s308_s21, 128  ;;  %s2152_s12 = smov [#allocation11]  }
  0x98   : > { %p2040_p11 = scmp.ne.s32.totalorder %s308_s21, %s2039_s16  ;;  %s2044_s2 = sshll.u32 %s2152_s12, 4  ;;  %s2045_s2 = int_to_ptr.vmem [resolvable:$false] %s2044_s2 }
  0x99   : > { %s2046_s11 = scalar_lea.vmem %s2045_s2, 256  ;;  %p2047_p5 = scmp.lt.s32.totalorder %s308_s21, %s2045_s2 }
  0x9a   : > { %p2042_p13 = pnand %p2040_p11, %p2730_p8  ;;  %p2048_p4 = scmp.lt.s32.totalorder %s2046_s11, %s2039_s16 }
  0x9c   : > { %p2043_p1 = pneg %p2042_p13  ;;  %p2049_p12 = por %p2048_p4, %p2047_p5 }
  0x9e   : > { %p2050_p7 = pnand %p2049_p12, %p2043_p1 }
  0xa0   : > { %2053 = shalt.err (!%p2050_p7)
}
  0xa1   : > { %p2731_p10 = scmp.ne.s32.totalorder %s2719_s14, 0  ;;  %p2732_p3 = scmp.ne.s32.totalorder %s2717_s10, 0 }
  0xa2   : > { %p2733_p8 = scmp.eq.s32.totalorder (!%p2732_p3), %s2222_s27, 0 }
  0xa3   : > { %1809 = dma.hbm_to_vmem [thread:$0]  (!%p2731_p10), %s2438_s29, 128, %s308_s21, %s2338_s28  }
  0xa4   : > { %316 = sbr.rel (%p2732_p3) target bundleno = 1213 (0x4bd), region = 44 }
  0xab   : > { %2107 = dma.done.wait (%p2733_p8), [#allocation5], 1024   ;;  %p2734_p9 = pmov %p2733_p8 }
  0xac   : > { %p2735_p0 = pmov %p2733_p8 }
  0xad   : > { %2109 = vsyncadd (%p2734_p9), [#allocation5], 4294966272 }
  0xae   : > { %2111 = dma.done.wait (%p2735_p0), [#allocation8], 1024   ;;  %p2736_p6 = pmov %p2735_p0 }
  0xaf   : > { %s326_s14 = sand.u32 1, %s2222_s27   ;;  %s2470_s28 = sand.u32 1, %s2128_s22  }
  0xb0   : > { %2113 = vsyncadd (%p2736_p6), [#allocation8], 4294966272  ;;  %s1556_s10 = sshll.u32 %s2470_s28, 6  ;;  %s327_s5 = scalar_lea.sflag [#allocation5], %s326_s14 }
  0xb1   : > { %s2473_s17 = scalar_lea.vmem [#allocation9], %s1556_s10  ;;  %p2737_p2 = scmp.ne.s32.totalorder %s2712_s7, 0 }
  0xb3   : > { %2115 = dma.done.wait (%p2737_p2), %s327_s5, 2176  }
  0xb4   : > { %2117 = vsyncadd (%p2737_p2), %s327_s5, 4294965120  ;;  %s1558_s20 = sshll.u32 %s2470_s28, 3  ;;  %s1559_s29 = sshll.u32 %s2470_s28, 1 }
  0xb5   : > { %p388_p11 = scmp.eq.s32.totalorder %s2136_s24, 0  ;;  %s2482_s13 = scalar_lea.vmem [#allocation10], %s1556_s10 }
  0xb6   : > { %s2484_s27 = scalar_lea.vmem [#allocation11], %s1558_s20  ;;  %s2486_s21 = scalar_lea.vmem [#allocation12], %s1559_s29  ;;  %v1874_v0 = vld [vmem:[#allocation7] sm:$0xff] (%p388_p11)   ;;  %v1875_v1 = vld [vmem:[#allocation7 + $0x8] sm:$0xff] (%p388_p11)   ;;  %v1876_v2 = vld [vmem:[#allocation7 + $0x10] sm:$0xff] (%p388_p11)  }
  0xb7   : > { %393 = sbr.rel (!%p388_p11) target bundleno = 190 (0xbe), region = 68  ;;  %458 = vst [vmem:[#allocation2] sm:$0xff] (%p388_p11), %v1874_v0  ;;  %459 = vst [vmem:[#allocation2 + $0x8] sm:$0xff] (%p388_p11), %v1875_v1  ;;  %v1877_v3 = vld [vmem:[#allocation7 + $0x18] sm:$0xff] (%p388_p11)   ;;  %v1878_v4 = vld [vmem:[#allocation7 + $0x20] sm:$0xff] (%p388_p11)  }
  0xb8   : > { %460 = vst [vmem:[#allocation2 + $0x10] sm:$0xff] (%p388_p11), %v1876_v2  ;;  %461 = vst [vmem:[#allocation2 + $0x18] sm:$0xff] (%p388_p11), %v1877_v3  ;;  %v1879_v5 = vld [vmem:[#allocation7 + $0x28] sm:$0xff] (%p388_p11)   ;;  %v1880_v6 = vld [vmem:[#allocation7 + $0x30] sm:$0xff] (%p388_p11)  }
  0xb9   : > { %462 = vst [vmem:[#allocation2 + $0x20] sm:$0xff] (%p388_p11), %v1878_v4  ;;  %463 = vst [vmem:[#allocation2 + $0x28] sm:$0xff] (%p388_p11), %v1879_v5  ;;  %v1881_v7 = vld [vmem:[#allocation7 + $0x38] sm:$0xff] (%p388_p11)  }
  0xba   : > { %464 = vst [vmem:[#allocation2 + $0x30] sm:$0xff] (%p388_p11), %v1880_v6  ;;  %465 = vst [vmem:[#allocation2 + $0x38] sm:$0xff] (%p388_p11), %v1881_v7 }
  0xbe PF: > { %v490_v8 = vld [vmem:[#allocation2] sm:$0xff]  ;;  %v491_v9 = vld [vmem:[#allocation2 + $0x8] sm:$0xff]  ;;  %v1892_v16 = vld [vmem:[%s2473_s17 + $0x10] sm:$0xff]   ;;  %vm2154_vm0 = vmmov 0   ;;  %s2738_s7 = sld [smem:[#allocation18_spill]]  ;;  %s2739_s0 = sld [smem:[#allocation22_spill]] }
  0xbf   : > { %1661 = vmatprep.subr.bf16.mxu0 %v490_v8  ;;  %v1882_v10 = vld [vmem:[#allocation4] sm:$0xff]   ;;  %v492_v11 = vld [vmem:[#allocation2 + $0x10] sm:$0xff]  ;;  %v493_v12 = vld [vmem:[#allocation2 + $0x18] sm:$0xff]  ;;  %s1598_s18 = sshll.u32 %s2136_s24, 5  ;;  %s1398_s19 = sshll.u32 %s2486_s21, 4  ;;  %s2634_s19 = int_to_ptr.vmem [resolvable:$true] %s1398_s19 }
  0xc0   : > { %1662 = vmatpush3.bf16.msra.mxu0 %v490_v8  ;;  %1677 = vmatprep.mubr.bf16.mxu0 %v1882_v10  ;;  %v494_v13 = vld [vmem:[#allocation2 + $0x20] sm:$0xff]  ;;  %v1891_v15 = vld [vmem:[%s2473_s17 + $0x8] sm:$0xff]   ;;  %v1893_v18 = vld [vmem:[%s2473_s17 + $0x18] sm:$0xff]   ;;  %s2740_s12 = sld [smem:[#allocation23_spill]]  ;;  %s1385_s11 = scalar_lea.sflag [#allocation6], %s2470_s28 }
  0xc1   : > { %1663 = vmatprep.subr.bf16.mxu0 %v491_v9  ;;  %v1890_v14 = vld [vmem:[%s2473_s17] sm:$0xff]   ;;  %v495_v17 = vld [vmem:[#allocation2 + $0x28] sm:$0xff]  ;;  %v496_v19 = vld [vmem:[#allocation2 + $0x30] sm:$0xff]  ;;  %s2054_s14 = scalar_lea.vmem %s2634_s19, 32  ;;  %s2155_s24 = smov [#allocation12]  }
  0xc2   : > { %1693 = vmatprep.subr.bf16.mxu1 %v1890_v14  ;;  %v1894_v20 = vld [vmem:[%s2473_s17 + $0x20] sm:$0xff]   ;;  %v497_v21 = vld [vmem:[#allocation2 + $0x38] sm:$0xff]  ;;  %v1895_v22 = vld [vmem:[%s2473_s17 + $0x28] sm:$0xff]   ;;  %p2055_p13 = scmp.ne.s32.totalorder %s2634_s19, %s2054_s14  ;;  %s2058_s10 = sshll.u32 %s2155_s24, 4  ;;  %s2059_s10 = int_to_ptr.vmem [resolvable:$false] %s2058_s10 }
  0xc3   : > { %1694 = vmatpush3.bf16.msra.mxu1 %v1890_v14  ;;  %v1883_v23 = vld [vmem:[#allocation4 + $0x8] sm:$0xff]   ;;  %v1884_v24 = vld [vmem:[#allocation4 + $0x10] sm:$0xff]   ;;  %v1885_v26 = vld [vmem:[#allocation4 + $0x18] sm:$0xff]   ;;  %s2060_s5 = scalar_lea.vmem %s2059_s10, 64  ;;  %p2061_p12 = scmp.lt.s32.totalorder %s2634_s19, %s2059_s10 }
  0xc4   : > { %1664 = vmatpush3.bf16.msra.mxu0 %v491_v9  ;;  %1695 = vmatprep.subr.bf16.mxu1 %v1891_v15  ;;  %v1896_v25 = vld [vmem:[%s2473_s17 + $0x30] sm:$0xff]   ;;  %v1886_v27 = vld [vmem:[#allocation4 + $0x20] sm:$0xff]   ;;  %v1887_v28 = vld [vmem:[#allocation4 + $0x28] sm:$0xff]   ;;  %p2741_p1 = scmp.ne.s32.totalorder %s2738_s7, 0  ;;  %p2062_p7 = scmp.lt.s32.totalorder %s2060_s5, %s2054_s14 }
  0xc5   : > { %1665 = vmatprep.subr.bf16.mxu0 %v492_v11  ;;  %v1888_v29 = vld [vmem:[#allocation4 + $0x30] sm:$0xff]   ;;  %v1889_v30 = vld [vmem:[#allocation4 + $0x38] sm:$0xff]   ;;  %v1898_v32 = vld [vmem:[%s2482_s13] sm:$0xff]  }
  0xc6   : > { %v1897_v31 = vld [vmem:[%s2473_s17 + $0x38] sm:$0xff]   ;;  %v1899_v33 = vld [vmem:[%s2482_s13 + $0x8] sm:$0xff]   ;;  %v1900_v34 = vld [vmem:[%s2482_s13 + $0x10] sm:$0xff]   ;;  %s2632_s2 = scalar_lea.hbm %s2740_s12, %s1598_s18  ;;  %p2056_p5 = pnand %p2055_p13, %p2741_p1 }
  0xc7   : > { %1696 = vmatpush3.bf16.msra.mxu1 %v1891_v15  ;;  %v1901_v35 = vld [vmem:[%s2482_s13 + $0x18] sm:$0xff]   ;;  %v1902_v36 = vld [vmem:[%s2482_s13 + $0x20] sm:$0xff]   ;;  %v1903_v37 = vld [vmem:[%s2482_s13 + $0x28] sm:$0xff]   ;;  %p2063_p10 = por %p2062_p7, %p2061_p12 }
  0xc8   : > { %1666 = vmatpush3.bf16.msra.mxu0 %v492_v11  ;;  %1697 = vmatprep.subr.bf16.mxu1 %v1892_v16  ;;  %v1904_v62 = vld [vmem:[%s2482_s13 + $0x30] sm:$0xff]   ;;  %v1905_v63 = vld [vmem:[%s2482_s13 + $0x38] sm:$0xff]   ;;  %v1577_v0 = vld [vmem:[%s2484_s27] ss:$0 sm:$0xff]  ;;  %p2057_p4 = pneg %p2056_p5 }
  0xc9   : > { %1667 = vmatprep.subr.bf16.mxu0 %v493_v12 }
  0xca   : > { %p2064_p3 = pnand %p2063_p10, %p2057_p4 }
  0xcb   : > { %1698 = vmatpush3.bf16.msra.mxu1 %v1892_v16 }
  0xcc   : > { %1668 = vmatpush3.bf16.msra.mxu0 %v493_v12  ;;  %1699 = vmatprep.subr.bf16.mxu1 %v1893_v18 }
  0xcd   : > { %1669 = vmatprep.subr.bf16.mxu0 %v494_v13 }
  0xcf   : > { %1700 = vmatpush3.bf16.msra.mxu1 %v1893_v18 }
  0xd0   : > { %1670 = vmatpush3.bf16.msra.mxu0 %v494_v13  ;;  %1701 = vmatprep.subr.bf16.mxu1 %v1894_v20 }
  0xd1   : > { %1671 = vmatprep.subr.bf16.mxu0 %v495_v17 }
  0xd3   : > { %1702 = vmatpush3.bf16.msra.mxu1 %v1894_v20 }
  0xd4   : > { %1672 = vmatpush3.bf16.msra.mxu0 %v495_v17  ;;  %1703 = vmatprep.subr.bf16.mxu1 %v1895_v22 }
  0xd5   : > { %1673 = vmatprep.subr.bf16.mxu0 %v496_v19 }
  0xd7   : > { %1704 = vmatpush3.bf16.msra.mxu1 %v1895_v22 }
  0xd8   : > { %1674 = vmatpush3.bf16.msra.mxu0 %v496_v19  ;;  %1705 = vmatprep.subr.bf16.mxu1 %v1896_v25 }
  0xd9   : > { %1675 = vmatprep.subr.bf16.mxu0 %v497_v21 }
  0xdb   : > { %1706 = vmatpush3.bf16.msra.mxu1 %v1896_v25 }
  0xdc   : > { %1676 = vmatpush3.bf16.msra.mxu0 %v497_v21  ;;  %1707 = vmatprep.subr.bf16.mxu1 %v1897_v31 }
  0xdd   : > { %1725 = vmatprep.subr.bf16.mxu0 %v1898_v32 }
  0xdf   : > { %1678 = vmatmul.mubr.bf16.vlgmr.msra.gmra.mrb[0].mxu0 %v1883_v23  ;;  %1708 = vmatpush3.bf16.msra.mxu1 %v1897_v31 }
  0xe0   : > { %1681 = vmatprep.mubr.bf16.mxu0 %v1884_v24  ;;  %1726 = vmatpush3.bf16.msra.mxu0 %v1898_v32 }
  0xe1   : > { %1727 = vmatprep.subr.bf16.mxu0 %v1899_v33 }
  0xe4   : > { %1728 = vmatpush3.bf16.msra.mxu0 %v1899_v33 }
  0xe5   : > { %1729 = vmatprep.subr.bf16.mxu0 %v1900_v34 }
  0xe7   : > { %1682 = vmatmul.mubr.bf16.gmra.mrb[4].mxu0 %v1885_v26 }
  0xe8   : > { %1685 = vmatprep.mubr.bf16.mxu0 %v1886_v27  ;;  %1730 = vmatpush3.bf16.msra.mxu0 %v1900_v34 }
  0xe9   : > { %1731 = vmatprep.subr.bf16.mxu0 %v1901_v35 }
  0xec   : > { %1732 = vmatpush3.bf16.msra.mxu0 %v1901_v35 }
  0xed   : > { %1733 = vmatprep.subr.bf16.mxu0 %v1902_v36 }
  0xef   : > { %1686 = vmatmul.mubr.bf16.gmra.mrb[8].mxu0 %v1887_v28 }
  0xf0   : > { %1689 = vmatprep.mubr.bf16.mxu0 %v1888_v29  ;;  %1734 = vmatpush3.bf16.msra.mxu0 %v1902_v36 }
  0xf1   : > { %1735 = vmatprep.subr.bf16.mxu0 %v1903_v37 }
  0xf4   : > { %1736 = vmatpush3.bf16.msra.mxu0 %v1903_v37 }
  0xf5   : > { %1737 = vmatprep.subr.bf16.mxu0 %v1904_v62 }
  0xf7   : > { %1690 = vmatmul.mubr.bf16.gmra.mrb[12].mxu0 %v1889_v30 }
  0xf8   : > { %1738 = vmatpush3.bf16.msra.mxu0 %v1904_v62 }
  0xf9   : > { %1739 = vmatprep.subr.bf16.mxu0 %v1905_v63 }
  0xfc   : > { %1740 = vmatpush3.bf16.msra.mxu0 %v1905_v63 }
 0x1b2   : > { %v1679_v38 = vpop.f32.mrb[0].mxu0 }
 0x1b3   : > { %v612_v39 = vpop.f32.mrb[1].mxu0 }
 0x1b4   : > { %v1680_v40 = vpop.f32.mrb[2].mxu0 }
 0x1b5   : > { %v731_v41 = vpack.c.bf16 %v1680_v40, %v1679_v38  ;;  %v615_v42 = vpop.f32.mrb[3].mxu0 }
 0x1b6   : > { %v730_v43 = vpack.c.bf16 %v615_v42, %v612_v39 }
 0x1b8   : > { %1709 = vmatprep.mubr.bf16.mxu1 %v730_v43 }
 0x1b9   : > { %1710 = vmatmul.mubr.bf16.vlgmr.msra.gmra.mrb[0].mxu1 %v731_v41 }
 0x1ba   : > { %v1683_v44 = vpop.f32.mrb[4].mxu0 }
 0x1bb   : > { %v628_v45 = vpop.f32.mrb[5].mxu0 }
 0x1bc   : > { %v1684_v46 = vpop.f32.mrb[6].mxu0 }
 0x1bd   : > { %v733_v47 = vpack.c.bf16 %v1684_v46, %v1683_v44  ;;  %v631_v48 = vpop.f32.mrb[7].mxu0 }
 0x1be   : > { %v732_v49 = vpack.c.bf16 %v631_v48, %v628_v45 }
 0x1c0   : > { %1713 = vmatprep.mubr.bf16.mxu1 %v732_v49 }
 0x1c1   : > { %1714 = vmatmul.mubr.bf16.gmra.mrb[4].mxu1 %v733_v47 }
 0x1c2   : > { %v1687_v50 = vpop.f32.mrb[8].mxu0 }
 0x1c3   : > { %v644_v51 = vpop.f32.mrb[9].mxu0 }
 0x1c4   : > { %v1688_v52 = vpop.f32.mrb[10].mxu0 }
 0x1c5   : > { %v735_v53 = vpack.c.bf16 %v1688_v52, %v1687_v50  ;;  %v647_v54 = vpop.f32.mrb[11].mxu0 }
 0x1c6   : > { %v734_v55 = vpack.c.bf16 %v647_v54, %v644_v51 }
 0x1c8   : > { %1717 = vmatprep.mubr.bf16.mxu1 %v734_v55 }
 0x1c9   : > { %1718 = vmatmul.mubr.bf16.gmra.mrb[8].mxu1 %v735_v53 }
 0x1ca   : > { %v1691_v56 = vpop.f32.mrb[12].mxu0 }
 0x1cb   : > { %v660_v57 = vpop.f32.mrb[13].mxu0 }
 0x1cc   : > { %v1692_v58 = vpop.f32.mrb[14].mxu0 }
 0x1cd   : > { %v737_v59 = vpack.c.bf16 %v1692_v58, %v1691_v56  ;;  %v663_v60 = vpop.f32.mrb[15].mxu0  ;;  %v2508_v58 = vld [vmem:[%s2484_s27 + $0x1] ss:$0 sm:$0xff] }
 0x1ce   : > { %v736_v61 = vpack.c.bf16 %v663_v60, %v660_v57  ;;  %v2153_v57 = vmov 0.0  }
 0x1cf   : > { %1757 = vmatprep.subr.bf16.mxu1 %v2153_v57 }
 0x1d0   : > { %1721 = vmatprep.mubr.bf16.mxu1 %v736_v61 }
 0x1d1   : > { %1722 = vmatmul.mubr.bf16.gmra.mrb[12].mxu1 %v737_v59 }
 0x1d2   : > { %1773 = vmatprep.mubr.msk.bf16.mxu1 %vm2154_vm0, %v2153_v57 }
 0x28c   : > { %v1711_v1 = vpop.f32.mrb[0].mxu1 }
 0x28d   : > { %v849_v2 = vadd.f32 %v1711_v1, %v1577_v0  ;;  %v840_v3 = vpop.f32.mrb[1].mxu1 }
 0x28e   : > { %v841_v4 = vadd.f32 %v1577_v0, %v840_v3  ;;  %v1712_v5 = vpop.f32.mrb[2].mxu1 }
 0x28f   : > { %v852_v6 = vadd.f32 %v1712_v5, %v1577_v0  ;;  %v843_v7 = vpop.f32.mrb[3].mxu1  ;;  %v905_v9 = vmax.f32 %v849_v2, 0.0 }
 0x290   : > { %v844_v8 = vadd.f32 %v1577_v0, %v843_v7  ;;  %v903_v11 = vmax.f32 %v841_v4, 0.0 }
 0x291   : > { %v906_v10 = vmax.f32 %v852_v6, 0.0 }
 0x292   : > { %v904_v12 = vmax.f32 %v844_v8, 0.0 }
 0x293   : > { %v920_v13 = vpack.c.bf16 %v906_v10, %v905_v9 }
 0x294   : > { %v919_v14 = vpack.c.bf16 %v904_v12, %v903_v11  ;;  %v1715_v15 = vpop.f32.mrb[4].mxu1 }
 0x295   : > { %v865_v16 = vadd.f32 %v1715_v15, %v1577_v0  ;;  %v856_v17 = vpop.f32.mrb[5].mxu1 }
 0x296   : > { %v857_v18 = vadd.f32 %v1577_v0, %v856_v17  ;;  %v1716_v19 = vpop.f32.mrb[6].mxu1  ;;  %1741 = vmatprep.mubr.bf16.mxu0 %v919_v14 }
 0x297   : > { %v868_v20 = vadd.f32 %v1716_v19, %v1577_v0  ;;  %v859_v21 = vpop.f32.mrb[7].mxu1  ;;  %1742 = vmatmul.mubr.bf16.vlgmr.msra.gmra.mrb[16].mxu0 %v920_v13  ;;  %v909_v23 = vmax.f32 %v865_v16, 0.0 }
 0x298   : > { %v860_v22 = vadd.f32 %v1577_v0, %v859_v21  ;;  %v907_v25 = vmax.f32 %v857_v18, 0.0 }
 0x299   : > { %v910_v24 = vmax.f32 %v868_v20, 0.0 }
 0x29a   : > { %v908_v26 = vmax.f32 %v860_v22, 0.0 }
 0x29b   : > { %v922_v27 = vpack.c.bf16 %v910_v24, %v909_v23 }
 0x29c   : > { %v921_v28 = vpack.c.bf16 %v908_v26, %v907_v25  ;;  %v1719_v29 = vpop.f32.mrb[8].mxu1 }
 0x29d   : > { %v881_v30 = vadd.f32 %v1719_v29, %v1577_v0  ;;  %v872_v31 = vpop.f32.mrb[9].mxu1 }
 0x29e   : > { %v873_v32 = vadd.f32 %v1577_v0, %v872_v31  ;;  %v1720_v33 = vpop.f32.mrb[10].mxu1  ;;  %1745 = vmatprep.mubr.bf16.mxu0 %v921_v28 }
 0x29f   : > { %v884_v34 = vadd.f32 %v1720_v33, %v1577_v0  ;;  %v875_v35 = vpop.f32.mrb[11].mxu1  ;;  %1746 = vmatmul.mubr.bf16.gmra.mrb[20].mxu0 %v922_v27  ;;  %v913_v37 = vmax.f32 %v881_v30, 0.0 }
 0x2a0   : > { %v876_v36 = vadd.f32 %v1577_v0, %v875_v35  ;;  %v911_v39 = vmax.f32 %v873_v32, 0.0 }
 0x2a1   : > { %v914_v38 = vmax.f32 %v884_v34, 0.0 }
 0x2a2   : > { %v912_v40 = vmax.f32 %v876_v36, 0.0 }
 0x2a3   : > { %v924_v41 = vpack.c.bf16 %v914_v38, %v913_v37 }
 0x2a4   : > { %v923_v42 = vpack.c.bf16 %v912_v40, %v911_v39  ;;  %v1723_v43 = vpop.f32.mrb[12].mxu1 }
 0x2a5   : > { %v897_v44 = vadd.f32 %v1723_v43, %v1577_v0  ;;  %v888_v45 = vpop.f32.mrb[13].mxu1 }
 0x2a6   : > { %v889_v46 = vadd.f32 %v1577_v0, %v888_v45  ;;  %v1724_v47 = vpop.f32.mrb[14].mxu1  ;;  %1749 = vmatprep.mubr.bf16.mxu0 %v923_v42 }
 0x2a7   : > { %v900_v48 = vadd.f32 %v1724_v47, %v1577_v0  ;;  %v891_v49 = vpop.f32.mrb[15].mxu1  ;;  %1750 = vmatmul.mubr.bf16.gmra.mrb[24].mxu0 %v924_v41  ;;  %v917_v51 = vmax.f32 %v897_v44, 0.0 }
 0x2a8   : > { %v892_v50 = vadd.f32 %v1577_v0, %v891_v49  ;;  %v915_v53 = vmax.f32 %v889_v46, 0.0 }
 0x2a9   : > { %v918_v52 = vmax.f32 %v900_v48, 0.0 }
 0x2aa   : > { %v916_v54 = vmax.f32 %v892_v50, 0.0 }
 0x2ab   : > { %v926_v55 = vpack.c.bf16 %v918_v52, %v917_v51 }
 0x2ac   : > { %v925_v56 = vpack.c.bf16 %v916_v54, %v915_v53 }
 0x2ae   : > { %1753 = vmatprep.mubr.bf16.mxu0 %v925_v56 }
 0x2af   : > { %1754 = vmatmul.mubr.bf16.gmra.mrb[28].mxu0 %v926_v55 }
 0x36a   : > { %v1743_v59 = vpop.f32.mrb[16].mxu0 }
 0x36b   : > { %v2511_v60 = vadd.f32 %v1743_v59, %v2508_v58  ;;  %v1029_v61 = vpop.f32.mrb[17].mxu0 }
 0x36c   : > { %v1030_v62 = vadd.f32 %v2508_v58, %v1029_v61  ;;  %v1744_v63 = vpop.f32.mrb[18].mxu0 }
 0x36d   : > { %v1094_v0 = vmax.f32 %v2511_v60, 0.0  ;;  %v2516_v1 = vadd.f32 %v1744_v63, %v2508_v58  ;;  %v1032_v2 = vpop.f32.mrb[19].mxu0 }
 0x36e   : > { %v2519_v3 = vadd.f32 %v2508_v58, %v1032_v2  ;;  %v2522_v5 = vmax.f32 %v1030_v62, 0.0 }
 0x36f   : > { %v1095_v4 = vmax.f32 %v2516_v1, 0.0  ;;  %v1175_v7 = vmul.f32 0.0, %v1094_v0 }
 0x370   : > { %v1093_v6 = vmax.f32 %v2519_v3, 0.0  ;;  %v1211_v13 = vmul.f32 %v2522_v5, %v2522_v5 }
 0x371   : > { %v1176_v10 = vmul.f32 0.0, %v1095_v4  ;;  %v1213_v18 = vmul.f32 %v1175_v7, %v1175_v7 }
 0x372   : > { %v1174_v8 = vmul.f32 0.0, %v1093_v6  ;;  %v1747_v9 = vpop.f32.mrb[20].mxu0 }
 0x373   : > { %v2532_v11 = vadd.f32 %v1747_v9, %v2508_v58  ;;  %v1045_v12 = vpop.f32.mrb[21].mxu0  ;;  %v1214_v26 = vmul.f32 %v1176_v10, %v1176_v10 }
 0x374   : > { %v1189_v14 = vadd.f32 %v1174_v8, %v2522_v5  ;;  %v1212_v15 = vmul.f32 %v1174_v8, %v1174_v8  ;;  %v2538_v16 = vadd.f32 %v2508_v58, %v1045_v12  ;;  %v1748_v17 = vpop.f32.mrb[22].mxu0 }
 0x375   : > { %v1098_v19 = vmax.f32 %v2532_v11, 0.0  ;;  %v2542_v20 = vadd.f32 %v1748_v17, %v2508_v58  ;;  %v1048_v21 = vpop.f32.mrb[23].mxu0 }
 0x376   : > { %v1190_v22 = vadd.f32 %v1189_v14, %v1175_v7  ;;  %v1227_v23 = vadd.f32 %v1212_v15, %v1211_v13  ;;  %v1096_v24 = vmax.f32 %v2538_v16, 0.0  ;;  %v2546_v25 = vadd.f32 %v2508_v58, %v1048_v21 }
 0x377   : > { %v1099_v27 = vmax.f32 %v2542_v20, 0.0  ;;  %v1179_v32 = vmul.f32 0.0, %v1098_v19 }
 0x378   : > { %v1228_v28 = vadd.f32 %v1227_v23, %v1213_v18  ;;  %v1177_v29 = vmul.f32 0.0, %v1096_v24  ;;  %v1191_v30 = vadd.f32 %v1190_v22, %v1176_v10  ;;  %v1097_v31 = vmax.f32 %v2546_v25, 0.0  ;;  %v1595_v25 = vld [vmem:[%s2484_s27 + $0x2] ss:$0 sm:$0xff] }
 0x379   : > { %v1180_v38 = vmul.f32 0.0, %v1099_v27  ;;  %v1217_v46 = vmul.f32 %v1179_v32, %v1179_v32 }
 0x37a   : > { %v1192_v33 = vadd.f32 %v1191_v30, %v1177_v29  ;;  %v1215_v34 = vmul.f32 %v1177_v29, %v1177_v29  ;;  %v1229_v35 = vadd.f32 %v1228_v28, %v1214_v26  ;;  %v1178_v36 = vmul.f32 0.0, %v1097_v31  ;;  %v1751_v37 = vpop.f32.mrb[24].mxu0 }
 0x37b   : > { %v2559_v39 = vadd.f32 %v1751_v37, %v2508_v58  ;;  %v1061_v40 = vpop.f32.mrb[25].mxu0  ;;  %v1218_v54 = vmul.f32 %v1180_v38, %v1180_v38 }
 0x37c   : > { %v1230_v41 = vadd.f32 %v1229_v35, %v1215_v34  ;;  %v1193_v42 = vadd.f32 %v1192_v33, %v1178_v36  ;;  %v1216_v43 = vmul.f32 %v1178_v36, %v1178_v36  ;;  %v2562_v44 = vadd.f32 %v2508_v58, %v1061_v40  ;;  %v1752_v45 = vpop.f32.mrb[26].mxu0 }
 0x37d   : > { %v1102_v47 = vmax.f32 %v2559_v39, 0.0  ;;  %v2566_v48 = vadd.f32 %v1752_v45, %v2508_v58  ;;  %v1064_v49 = vpop.f32.mrb[27].mxu0 }
 0x37e   : > { %v1194_v50 = vadd.f32 %v1193_v42, %v1179_v32  ;;  %v1231_v51 = vadd.f32 %v1230_v41, %v1216_v43  ;;  %v1100_v52 = vmax.f32 %v2562_v44, 0.0  ;;  %v2570_v53 = vadd.f32 %v2508_v58, %v1064_v49 }
 0x37f   : > { %v1103_v55 = vmax.f32 %v2566_v48, 0.0  ;;  %v1183_v63 = vmul.f32 0.0, %v1102_v47 }
 0x380   : > { %v1232_v56 = vadd.f32 %v1231_v51, %v1217_v46  ;;  %v1181_v59 = vmul.f32 0.0, %v1100_v52  ;;  %v1195_v61 = vadd.f32 %v1194_v50, %v1180_v38  ;;  %v1101_v62 = vmax.f32 %v2570_v53, 0.0  ;;  %v1596_v53 = vld [vmem:[%s2484_s27 + $0x3] ss:$0 sm:$0xff] }
 0x381   : > { %v1184_v12 = vmul.f32 0.0, %v1103_v55  ;;  %v1221_v23 = vmul.f32 %v1183_v63, %v1183_v63 }
 0x382   : > { %v1196_v2 = vadd.f32 %v1195_v61, %v1181_v59  ;;  %v1219_v7 = vmul.f32 %v1181_v59, %v1181_v59  ;;  %v1233_v8 = vadd.f32 %v1232_v56, %v1218_v54  ;;  %v1182_v9 = vmul.f32 0.0, %v1101_v62  ;;  %v1755_v10 = vpop.f32.mrb[28].mxu0 }
 0x383   : > { %v2583_v13 = vadd.f32 %v1755_v10, %v2508_v58  ;;  %v1077_v14 = vpop.f32.mrb[29].mxu0  ;;  %v1222_v35 = vmul.f32 %v1184_v12, %v1184_v12 }
 0x384   : > { %v1234_v15 = vadd.f32 %v1233_v8, %v1219_v7  ;;  %v1197_v17 = vadd.f32 %v1196_v2, %v1182_v9  ;;  %v1220_v18 = vmul.f32 %v1182_v9, %v1182_v9  ;;  %v2586_v21 = vadd.f32 %v2508_v58, %v1077_v14  ;;  %v1756_v22 = vpop.f32.mrb[30].mxu0 }
 0x385   : > { %v1106_v26 = vmax.f32 %v2583_v13, 0.0  ;;  %v1089_v28 = vadd.f32 %v1756_v22, %v2508_v58  ;;  %v1080_v29 = vpop.f32.mrb[31].mxu0 }
 0x386   : > { %v1198_v30 = vadd.f32 %v1197_v17, %v1183_v63  ;;  %v1235_v32 = vadd.f32 %v1234_v15, %v1220_v18  ;;  %v1104_v33 = vmax.f32 %v2586_v21, 0.0  ;;  %v1081_v34 = vadd.f32 %v2508_v58, %v1080_v29 }
 0x387   : > { %v1107_v36 = vmax.f32 %v1089_v28, 0.0  ;;  %v1187_v42 = vmul.f32 0.0, %v1106_v26 }
 0x388   : > { %v1236_v37 = vadd.f32 %v1235_v32, %v1221_v23  ;;  %v1185_v38 = vmul.f32 0.0, %v1104_v33  ;;  %v1199_v40 = vadd.f32 %v1198_v30, %v1184_v12  ;;  %v1105_v41 = vmax.f32 %v1081_v34, 0.0 }
 0x389   : > { %v1188_v51 = vmul.f32 0.0, %v1107_v36  ;;  %v1225_v59 = vmul.f32 %v1187_v42, %v1187_v42 }
 0x38a   : > { %v1200_v43 = vadd.f32 %v1199_v40, %v1185_v38  ;;  %v1223_v45 = vmul.f32 %v1185_v38, %v1185_v38  ;;  %v1237_v46 = vadd.f32 %v1236_v37, %v1222_v35  ;;  %v1186_v49 = vmul.f32 0.0, %v1105_v41 }
 0x38b   : > { %v1226_v2 = vmul.f32 %v1188_v51, %v1188_v51 }
 0x38c   : > { %v1238_v50 = vadd.f32 %v1237_v46, %v1223_v45  ;;  %v1201_v54 = vadd.f32 %v1200_v43, %v1186_v49  ;;  %v1224_v56 = vmul.f32 %v1186_v49, %v1186_v49 }
 0x38e   : > { %v1202_v61 = vadd.f32 %v1201_v54, %v1187_v42  ;;  %v1239_v63 = vadd.f32 %v1238_v50, %v1224_v56 }
 0x390   : > { %v1203_v58 = vadd.f32 %v1202_v61, %v1188_v51  ;;  %v1240_v7 = vadd.f32 %v1239_v63, %v1225_v59 }
 0x392   : > { %v1204_v8 = vrot.slane %v1203_v58, 4  ;;  %v1241_v9 = vadd.f32 %v1240_v7, %v1226_v2 }
 0x394   : > { %v1205_v10 = vadd.f32 %v1204_v8, %v1203_v58  ;;  %v1242_v12 = vrot.slane %v1241_v9, 4 }
 0x396   : > { %v1206_v13 = vrot.slane %v1205_v10, 2  ;;  %v1243_v14 = vadd.f32 %v1242_v12, %v1241_v9 }
 0x398   : > { %v1207_v15 = vadd.f32 %v1206_v13, %v1205_v10  ;;  %v1244_v17 = vrot.slane %v1243_v14, 2 }
 0x39a   : > { %v1208_v18 = vrot.slane %v1207_v15, 1  ;;  %v1245_v21 = vadd.f32 %v1244_v17, %v1243_v14 }
 0x39c   : > { %v1209_v22 = vadd.f32 %v1208_v18, %v1207_v15  ;;  %v1246_v23 = vrot.slane %v1245_v21, 1 }
 0x39e   : > { %v1210_v28 = vmul.f32 0.125, %v1209_v22  ;;  %v1247_v29 = vadd.f32 %v1246_v23, %v1245_v21 }
 0x3a0   : > { %v1248_v30 = vmul.f32 0.125, %v1247_v29  ;;  %v1249_v32 = vmul.f32 %v1210_v28, %v1210_v28  ;;  %v1265_v34 = vsub.f32 %v1105_v41, %v1210_v28  ;;  %v1252_v35 = vsub.f32 %v2522_v5, %v1210_v28 }
 0x3a1   : > { %v1253_v37 = vsub.f32 %v1093_v6, %v1210_v28  ;;  %v1254_v38 = vsub.f32 %v1094_v0, %v1210_v28  ;;  %v1255_v40 = vsub.f32 %v1095_v4, %v1210_v28  ;;  %v1256_v42 = vsub.f32 %v1096_v24, %v1210_v28 }
 0x3a2   : > { %v1250_v43 = vsub.f32 %v1248_v30, %v1249_v32  ;;  %v1257_v45 = vsub.f32 %v1097_v31, %v1210_v28  ;;  %v1258_v5 = vsub.f32 %v1098_v19, %v1210_v28  ;;  %v1259_v3 = vsub.f32 %v1099_v27, %v1210_v28 }
 0x3a3   : > { %v1260_v60 = vsub.f32 %v1100_v52, %v1210_v28  ;;  %v1261_v0 = vsub.f32 %v1101_v62, %v1210_v28  ;;  %v1262_v1 = vsub.f32 %v1102_v47, %v1210_v28  ;;  %v1263_v4 = vsub.f32 %v1103_v55, %v1210_v28 }
 0x3a4   : > { %v1251_v6 = vmax.f32 %v1250_v43, 0.0  ;;  %v1264_v16 = vsub.f32 %v1104_v33, %v1210_v28  ;;  %v1266_v11 = vsub.f32 %v1106_v26, %v1210_v28  ;;  %v1267_v19 = vsub.f32 %v1107_v36, %v1210_v28 }
 0x3a6   : > { %v1268_v24 = vadd.f32 1e-05, %v1251_v6 }
 0x3a8   : > { %1906 = vrsqrt.f32 %v1268_v24 }
 0x3b2   : > { %v1907_v20 = vpop.eup %1906 }
 0x3b3   : > { %v1283_v27 = vmul.f32 %v1907_v20, %v1265_v34  ;;  %v1270_v31 = vmul.f32 %v1907_v20, %v1252_v35  ;;  %v1271_v44 = vmul.f32 %v1907_v20, %v1253_v37  ;;  %v1272_v52 = vmul.f32 %v1907_v20, %v1254_v38 }
 0x3b4   : > { %v1273_v62 = vmul.f32 %v1907_v20, %v1255_v40  ;;  %v1274_v41 = vmul.f32 %v1907_v20, %v1256_v42  ;;  %v1275_v39 = vmul.f32 %v1907_v20, %v1257_v45  ;;  %v1276_v47 = vmul.f32 %v1907_v20, %v1258_v5 }
 0x3b5   : > { %v1303_v46 = vmul.f32 %v1595_v25, %v1283_v27  ;;  %v1290_v48 = vmul.f32 %v1595_v25, %v1270_v31  ;;  %v1291_v55 = vmul.f32 %v1595_v25, %v1271_v44  ;;  %v1292_v49 = vmul.f32 %v1595_v25, %v1272_v52 }
 0x3b6   : > { %v1293_v33 = vmul.f32 %v1595_v25, %v1273_v62  ;;  %v1294_v26 = vmul.f32 %v1595_v25, %v1274_v41  ;;  %v1295_v36 = vmul.f32 %v1595_v25, %v1275_v39  ;;  %v1277_v50 = vmul.f32 %v1907_v20, %v1259_v3 }
 0x3b7   : > { %v1323_v51 = vadd.f32 %v1596_v53, %v1303_v46  ;;  %v1310_v54 = vadd.f32 %v1596_v53, %v1290_v48  ;;  %v1311_v56 = vadd.f32 %v1596_v53, %v1291_v55  ;;  %v1312_v59 = vadd.f32 %v1596_v53, %v1292_v49 }
 0x3b8   : > { %v1313_v61 = vadd.f32 %v1596_v53, %v1293_v33  ;;  %v1314_v63 = vadd.f32 %v1596_v53, %v1294_v26  ;;  %v1315_v2 = vadd.f32 %v1596_v53, %v1295_v36  ;;  %v1296_v58 = vmul.f32 %v1595_v25, %v1276_v47 }
 0x3b9   : > { %v1326_v7 = vpack.c.bf16 %v1311_v56, %v1310_v54  ;;  %v1297_v8 = vmul.f32 %v1595_v25, %v1277_v50  ;;  %v1278_v9 = vmul.f32 %v1907_v20, %v1260_v60  ;;  %v1279_v10 = vmul.f32 %v1907_v20, %v1261_v0 }
 0x3ba   : > { %v1327_v12 = vpack.c.bf16 %v1313_v61, %v1312_v59  ;;  %v1328_v13 = vpack.c.bf16 %v1315_v2, %v1314_v63  ;;  %v1316_v14 = vadd.f32 %v1596_v53, %v1296_v58  ;;  %v1280_v15 = vmul.f32 %v1907_v20, %v1262_v1 }
 0x3bb   : > { %1758 = vmatpush3.bf16.msra.mxu1 %v1326_v7  ;;  %1376 = vst [vmem:[#allocation2] sm:$0xff] %v1326_v7  ;;  %v1317_v17 = vadd.f32 %v1596_v53, %v1297_v8  ;;  %v1298_v18 = vmul.f32 %v1595_v25, %v1278_v9  ;;  %v1299_v21 = vmul.f32 %v1595_v25, %v1279_v10 }
 0x3bc   : > { %v1281_v22 = vmul.f32 %v1907_v20, %v1263_v4  ;;  %1759 = vmatprep.subr.bf16.mxu1 %v2153_v57  ;;  %1377 = vst [vmem:[#allocation2 + $0x8] sm:$0xff] %v1327_v12  ;;  %1378 = vst [vmem:[#allocation2 + $0x10] sm:$0xff] %v1328_v13  ;;  %v1300_v23 = vmul.f32 %v1595_v25, %v1280_v15  ;;  %v1282_v28 = vmul.f32 %v1907_v20, %v1264_v16  ;;  %v1334_v16 = vld [vmem:[%s2739_s0] sm:$0x1] }
 0x3bd   : > { %v1284_v29 = vmul.f32 %v1907_v20, %v1266_v11  ;;  %v1285_v30 = vmul.f32 %v1907_v20, %v1267_v19  ;;  %v1329_v32 = vpack.c.bf16 %v1317_v17, %v1316_v14  ;;  %v1318_v34 = vadd.f32 %v1596_v53, %v1298_v18 }
 0x3be   : > { %v1319_v35 = vadd.f32 %v1596_v53, %v1299_v21  ;;  %v1301_v37 = vmul.f32 %v1595_v25, %v1281_v22  ;;  %v1320_v38 = vadd.f32 %v1596_v53, %v1300_v23  ;;  %v1302_v40 = vmul.f32 %v1595_v25, %v1282_v28 }
 0x3bf   : > { %v1304_v42 = vmul.f32 %v1595_v25, %v1284_v29  ;;  %v1305_v43 = vmul.f32 %v1595_v25, %v1285_v30  ;;  %1760 = vmatpush3.bf16.msra.mxu1 %v1327_v12  ;;  %1379 = vst [vmem:[#allocation2 + $0x18] sm:$0xff] %v1329_v32 }
 0x3c0   : > { %v1330_v45 = vpack.c.bf16 %v1319_v35, %v1318_v34  ;;  %v1321_v5 = vadd.f32 %v1596_v53, %v1301_v37  ;;  %1761 = vmatprep.subr.bf16.mxu1 %v2153_v57  ;;  %v1322_v3 = vadd.f32 %v1596_v53, %v1302_v40 }
 0x3c1   : > { %v1324_v60 = vadd.f32 %v1596_v53, %v1304_v42  ;;  %v1325_v0 = vadd.f32 %v1596_v53, %v1305_v43 }
 0x3c2   : > { %1380 = vst [vmem:[#allocation2 + $0x20] sm:$0xff] %v1330_v45  ;;  %v1331_v1 = vpack.c.bf16 %v1321_v5, %v1320_v38  ;;  %v1332_v4 = vpack.c.bf16 %v1323_v51, %v1322_v3 }
 0x3c3   : > { %v1333_v6 = vpack.c.bf16 %v1325_v0, %v1324_v60  ;;  %1762 = vmatpush3.bf16.msra.mxu1 %v1328_v13 }
 0x3c4   : > { %1381 = vst [vmem:[#allocation2 + $0x28] sm:$0xff] %v1331_v1  ;;  %1763 = vmatprep.subr.bf16.mxu1 %v2153_v57  ;;  %1382 = vst [vmem:[#allocation2 + $0x30] sm:$0xff] %v1332_v4 }
 0x3c5   : > { %1383 = vst [vmem:[#allocation2 + $0x38] sm:$0xff] %v1333_v6 }
 0x3c7   : > { %1764 = vmatpush3.bf16.msra.mxu1 %v1329_v32 }
 0x3c8   : > { %1765 = vmatprep.subr.bf16.mxu1 %v2153_v57 }
 0x3cb   : > { %1766 = vmatpush3.bf16.msra.mxu1 %v1330_v45 }
 0x3cc   : > { %1767 = vmatprep.subr.bf16.mxu1 %v2153_v57 }
 0x3cf   : > { %1768 = vmatpush3.bf16.msra.mxu1 %v1331_v1 }
 0x3d0   : > { %1769 = vmatprep.subr.bf16.mxu1 %v2153_v57 }
 0x3d3   : > { %1770 = vmatpush3.bf16.msra.mxu1 %v1332_v4 }
 0x3d4   : > { %1771 = vmatprep.subr.bf16.mxu1 %v2153_v57 }
 0x3d7   : > { %1772 = vmatpush3.bf16.msra.mxu1 %v1333_v6 }
 0x3da   : > { %1774 = vmatmul.mubr.bf16.vlgmr.msra.gmra.mrb[16].mxu1 %v1334_v16 }
 0x4ad   : > { %v1369_v11 = vpop.f32.mrb[16].mxu1 }
 0x4ae   : > { %1375 = vst [vmem:[%s2486_s21] sm:$0x3] %v1369_v11  ;;  %v1775_v57 = vpop.f32.mrb[17].mxu1 }
 0x4af   : > { %v1372_v19 = vpop.f32.mrb[18].mxu1 }
 0x4b0   : > { %2067 = shalt.err (!%p2064_p3)
}
 0x4b1   : > { %s2068_s28 = scalar_lea.hbm %s2632_s2, 32  ;;  %s2072_s29 = scalar_lea.hbm %s2740_s12, 64 }
 0x4b2   : > { %p2069_p8 = scmp.ne.s32.totalorder %s2632_s2, %s2068_s28  ;;  %p2073_p6 = scmp.lt.u32.totalorder %s2632_s2, %s2740_s12 }
 0x4b3   : > { %p2074_p2 = scmp.lt.u32.totalorder %s2072_s29, %s2068_s28  ;;  %p2076_p13 = scmp.lt.u32.totalorder %s2068_s28, %s2632_s2 }
 0x4b4   : > { %p2070_p9 = pnand %p2069_p8, %p2741_p1 }
 0x4b5   : > { %p2075_p11 = por %p2074_p2, %p2073_p6 }
 0x4b6   : > { %p2071_p0 = pneg %p2070_p9 }
 0x4b7   : > { %p2077_p5 = por %p2076_p13, %p2075_p11 }
 0x4b9   : > { %p2078_p4 = pnand %p2077_p5, %p2071_p0 }
 0x4bb   : > { %2081 = shalt.err (!%p2078_p4)
}
 0x4bc   : > { %1791 = dma.vmem_to_hbm [thread:$0]  (%p2741_p1), %s2634_s19, 32, %s2632_s2, %s1385_s11   ;;  %v1776_v24 = vpop.f32.mrb[19].mxu1 }
 0x4bd PF: > { %s2742_s21 = sld [smem:[#allocation17_spill]]  ;;  %s2743_s9 = sld [smem:[#allocation19_spill]] }
 0x4be   : > { %p2745_p7 = scmp.ge.s32.totalorder %s2144_s26, 2 }
 0x4c3   : > { %s1410_s6 = sand.u32 1, %s2742_s21   ;;  %p2744_p12 = scmp.ne.s32.totalorder %s2743_s9, 0 }
 0x4c4   : > { %s1411_s0 = scalar_lea.sflag [#allocation6], %s1410_s6 }
 0x4c5   : > { %p1811_p10 = pnand %p2745_p7, %p2744_p12 }
 0x4c7   : > { %2119 = dma.done.wait (!%p1811_p10), %s1411_s0, 32  }
 0x4c8   : > { %2121 = vsyncadd (!%p1811_p10), %s1411_s0, 4294967264  ;;  %s21_s26 = sadd.s32 1, %s2144_s26   ;;  %s2746_s21 = smov %s2128_s22 }
 0x4c9   : > { %p18_p3 = scmp.ge.s32.totalorder %s21_s26, 4   ;;  %s2747_s22 = smov %s2132_s23 }
 0x4ca   : > { %s2748_s23 = smov %s2327_s8  ;;  %s2749_s24 = smov %s2140_s25 }
 0x4cb   : > { %s2750_s25 = smov %s2752_s15  ;;  %20 = sbr.rel (!%p18_p3) target bundleno = 11 (0xb), region = 132 }
 0x4d2   :  { %1416 = vsyncpa [#allocation5], 1 }
 0x4d3   :  { %1418 = vsyncpa [#allocation5 + $0x1], 1 }
 0x4d4   :  { %1419 = vsyncpa [#allocation8], 1 }
 0x4d5   :  { %1420 = vsyncpa [#allocation6], 1 }
 0x4d6   :  { %1422 = vsyncpa [#allocation6 + $0x1], 1 }

</bundles_post_ra>
